<compile_context>
chip_gen: v6e
topology: v6e:2x2x1
jax: 0.10.0
libtpu: 0.0.40
codegen_flags: <defaults>
</compile_context>

<pallas_src>
import functools
import math

import jax
import jax.numpy as jnp
from jax.experimental import pallas as pl
from jax.experimental.pallas import tpu as pltpu


# ----------------------------------------------------------------------------
# Fused kernel: supports + Chebyshev stack + all layers of the decoder step.
# ----------------------------------------------------------------------------
def _adcrnn_step_kernel(emb_ref, x_ref, h_ref, w_ref, b_ref, out_ref, *,
                        cheb_k, hidden_dim, num_layers, dims_in, batch):
    """Layouts used inside the kernel:
         R-layout (projection / elementwise): (B*N, C)  rows = b*N + n
         P-layout (graph propagation / store): (N, B*C) lanes = b*C + c
    """
    n = emb_ref.shape[0]
    dh = hidden_dim

    # ---- adaptive supports S = softmax(relu(E E^T), axis=1), computed ONCE ----
    e = emb_ref[...]                                               # (N, De)
    a = jnp.dot(e, e.T, preferred_element_type=jnp.float32)        # (N, N)
    a = jnp.maximum(a, 0.0)
    a = a - jnp.max(a, axis=1, keepdims=True)
    ex = jnp.exp(a)
    s = ex / jnp.sum(ex, axis=1, keepdims=True)                    # exact softmax

    # ---- Chebyshev stack: T_1 = S, T_k = 2 S T_{k-1} - T_{k-2} (T_0 = I) ----
    # T_0 is never materialised for propagation (identity applied implicitly).
    # TODO(synk): when this step runs inside a per-timestep decode loop with
    # fixed node_embeddings, hoist supports + Chebyshev out of the kernel and
    # pass the (K-1, N, N) stack as an input instead of recomputing it.
    row = jax.lax.broadcasted_iota(jnp.int32, (n, n), 0)
    col = jax.lax.broadcasted_iota(jnp.int32, (n, n), 1)
    eye = (row == col).astype(jnp.float32)
    cheb_hi = [s]                                                  # T_1..T_{K-1}
    t_km2, t_km1 = eye, s
    for _ in range(2, cheb_k):
        t_k = 2.0 * jnp.dot(s, t_km1, preferred_element_type=jnp.float32) - t_km2
        cheb_hi.append(t_k)
        t_km2, t_km1 = t_km1, t_k

    # Layout converters: static lane/sublane slices + concats only
    # (no in-kernel reshapes; lowers robustly on Mosaic).
    def r_to_p(v_r, c):        # (B*N, c) -> (N, B*c)
        return jnp.concatenate(
            [v_r[b * n:(b + 1) * n, :] for b in range(batch)], axis=1)

    def p_to_r(v_p, c):        # (N, B*c) -> (B*N, c)
        return jnp.concatenate(
            [v_p[:, b * c:(b + 1) * c] for b in range(batch)], axis=0)

    def agcn_r(feat_r, w_wide, bias, dout):
        """AGCN via project-then-propagate; returns R-layout pre-activation.

        feat_r : (B*N, cin)
        w_wide : (cin, K*dout) -- column block k holds W[k*cin:(k+1)*cin, :]
        """
        proj = jnp.dot(feat_r, w_wide, preferred_element_type=jnp.float32)
        acc_r = proj[:, :dout]                                     # T_0 = I term
        if cheb_k > 1:
            prop_p = jnp.dot(
                cheb_hi[0], r_to_p(proj[:, dout:2 * dout], dout),
                preferred_element_type=jnp.float32)
            for k in range(2, cheb_k):
                prop_p = prop_p + jnp.dot(
                    cheb_hi[k - 1],
                    r_to_p(proj[:, k * dout:(k + 1) * dout], dout),
                    preferred_element_type=jnp.float32)
            acc_r = acc_r + p_to_r(prop_p, dout)
        return acc_r + bias

    # TODO(synk): at realistic shapes (N, B*C >= ~128) cast the MXU operands
    # (cheb_hi, projections, weight slab) to bfloat16 with f32 accumulation and
    # f32 elementwise gating; on v7x also add a parallel batch grid axis so
    # both TensorCores are used.
    x_r = x_ref[...]                                               # (B*N, Din_0)
    for layer in range(num_layers):
        din = dims_in[layer]
        cin = din + dh

        w_l = w_ref[layer]                                         # (max_cin, K*3*Dh)
        wg = w_l[:cin, :cheb_k * 2 * dh]                           # gate   (cin, K*2Dh)
        wu = w_l[:cin, cheb_k * 2 * dh:cheb_k * 3 * dh]            # update (cin, K*Dh)
        b_l = b_ref[layer]                                         # (1, 3*Dh)
        bg = b_l[:, :2 * dh]
        bu = b_l[:, 2 * dh:3 * dh]

        h_r = h_ref[layer]                                         # (B*N, Dh)

        # Gate: single merged z|r matmul; z, r via static lane slices.
        xh_r = jnp.concatenate([x_r, h_r], axis=1)                 # (B*N, cin)
        zr = jax.nn.sigmoid(agcn_r(xh_r, wg, bg, 2 * dh))          # (B*N, 2*Dh)
        z = zr[:, :dh]
        r = zr[:, dh:]

        # Update / candidate.
        xzh_r = jnp.concatenate([x_r, z * h_r], axis=1)            # (B*N, cin)
        hc = jnp.tanh(agcn_r(xzh_r, wu, bu, dh))                   # (B*N, Dh)

        h_new = r * h_r + (1.0 - r) * hc                           # (B*N, Dh)

        out_ref[layer] = r_to_p(h_new, dh)                         # lane-dense (N, B*Dh)
        x_r = h_new                                                # next layer's input


# ----------------------------------------------------------------------------
# ADCRNN_STEP forward (single pallas_call)
# ----------------------------------------------------------------------------
def adcrnn_step_forward(xt, init_state, node_embeddings, layer_raw_params, *,
                        dim_in, dim_out, cheb_k):
    """xt: (B, N, dim_in); init_state: (L, B, N, dim_out); node_embeddings: (N, De)."""
    assert cheb_k >= 2, "cheb_k >= 2 required (matches the PyTorch module's shapes)"
    b, n, _ = xt.shape
    num_layers = len(layer_raw_params)
    dh = dim_out
    de = node_embeddings.shape[1]
    dims_in = tuple(dim_in if i == 0 else dh for i in range(num_layers))
    max_cin = max(d + dh for d in dims_in)

    # R-layout activations: (b, n) rows, channels on lanes (pure reshapes).
    x_r = xt.reshape(b * n, dim_in).astype(jnp.float32)
    h_r = init_state.reshape(num_layers, b * n, dh).astype(jnp.float32)

    # Pack all weights/biases into one lane-dense slab each.
    # Weight column layout per layer: [Wg_0 | ... | Wg_{K-1} | Wu_0 | ... | Wu_{K-1}].
    w_rows, b_rows = [], []
    for l, (gw, gb, uw, ub) in enumerate(layer_raw_params):
        cin = dims_in[l] + dh
        gw = gw.astype(jnp.float32)
        uw = uw.astype(jnp.float32)
        wg_wide = jnp.concatenate(
            [gw[k * cin:(k + 1) * cin, :] for k in range(cheb_k)], axis=1)  # (cin, K*2Dh)
        wu_wide = jnp.concatenate(
            [uw[k * cin:(k + 1) * cin, :] for k in range(cheb_k)], axis=1)  # (cin, K*Dh)
        w_l = jnp.concatenate([wg_wide, wu_wide], axis=1)                   # (cin, K*3Dh)
        if cin < max_cin:
            w_l = jnp.pad(w_l, ((0, max_cin - cin), (0, 0)))
        w_rows.append(w_l)
        b_rows.append(jnp.concatenate([gb, ub]).astype(jnp.float32).reshape(1, 3 * dh))
    w_slab = jnp.stack(w_rows)                                     # (L, max_cin, K*3*Dh)
    b_slab = jnp.stack(b_rows)                                     # (L, 1, 3*Dh)

    kernel = functools.partial(
        _adcrnn_step_kernel, cheb_k=cheb_k, hidden_dim=dh,
        num_layers=num_layers, dims_in=dims_in, batch=b)

    # Advisory cost estimate (helps XLA schedule around the custom call).
    flops = 2 * n * n * de + max(cheb_k - 2, 0) * 2 * n * n * n
    trans = n * n
    for din_l in dims_in:
        cin = din_l + dh
        flops += 2 * b * n * cin * (cheb_k * 3 * dh)               # projections
        flops += (cheb_k - 1) * 2 * n * n * (b * 3 * dh)           # propagations
        flops += 10 * b * n * dh                                   # gating
        trans += 3 * b * n * dh                                    # sigmoid + tanh
    bytes_accessed = 4 * (n * de + x_r.size + h_r.size + w_slab.size
                          + b_slab.size + num_layers * n * b * dh)

    in_specs = [
        pl.BlockSpec(node_embeddings.shape, lambda i: (0, 0)),
        pl.BlockSpec(x_r.shape, lambda i: (0, 0)),
        pl.BlockSpec(h_r.shape, lambda i: (0, 0, 0)),
        # TODO(synk): single-buffer the constant weight/bias slabs
        # (pipeline_mode=pl.Buffered(1)) once verified on the target JAX build.
        pl.BlockSpec(w_slab.shape, lambda i: (0, 0, 0)),
        pl.BlockSpec(b_slab.shape, lambda i: (0, 0, 0)),
    ]

    out = pl.pallas_call(
        kernel,
        out_shape=jax.ShapeDtypeStruct((num_layers, n, b * dh), jnp.float32),
        grid=(1,),
        in_specs=in_specs,
        out_specs=pl.BlockSpec((num_layers, n, b * dh), lambda i: (0, 0, 0)),
        compiler_params=pltpu.CompilerParams(
            dimension_semantics=("arbitrary",),
            vmem_limit_bytes=32 * 1024 * 1024),
        cost_estimate=pl.CostEstimate(flops=int(flops),
                                      transcendentals=int(trans),
                                      bytes_accessed=int(bytes_accessed)),
    )(node_embeddings.astype(jnp.float32), x_r, h_r, w_slab, b_slab)

    # (L, N, B*Dh) -> (L, B, N, Dh) in XLA (cheap, fused with downstream ops).
    hiddens = jnp.transpose(out.reshape(num_layers, n, b, dh), (0, 2, 1, 3))
    output_hidden = [hiddens[i] for i in range(num_layers)]
    return hiddens[num_layers - 1], output_hidden


# ----------------------------------------------------------------------------
# Parameter init (deterministic, mirrors nn.init.xavier_normal_ / constant 0)
# ----------------------------------------------------------------------------
def _xavier_normal(key, rows, cols):
    std = math.sqrt(2.0 / (rows + cols))
    return std * jax.random.normal(key, (rows, cols), dtype=jnp.float32)


def init_agcn_params(key, dim_in, dim_out, cheb_k):
    w = _xavier_normal(key, cheb_k * dim_in, dim_out)   # (K*Din, Dout), PyTorch order
    b = jnp.zeros((dim_out,), dtype=jnp.float32)
    return w, b


# ----------------------------------------------------------------------------
# Pure-JAX reference (direct transcription of the PyTorch module)
# ----------------------------------------------------------------------------
def _agcn_ref(x, node_emb, w, b, cheb_k):
    n = node_emb.shape[0]
    s = jax.nn.softmax(jax.nn.relu(node_emb @ node_emb.T), axis=1)
    sup = [jnp.eye(n, dtype=jnp.float32), s]
    for _ in range(2, cheb_k):
        sup.append(2.0 * s @ sup[-1] - sup[-2])
    sup = sup[:cheb_k]
    x_g = jnp.concatenate([jnp.einsum('nm,bmc->bnc', sk, x) for sk in sup], axis=-1)
    return jnp.einsum('bni,io->bno', x_g, w) + b


def _cell_ref(x, h, node_emb, gw, gb, uw, ub, cheb_k, dh):
    zr = jax.nn.sigmoid(_agcn_ref(jnp.concatenate([x, h], -1), node_emb, gw, gb, cheb_k))
    z, r = zr[..., :dh], zr[..., dh:]
    hc = jnp.tanh(_agcn_ref(jnp.concatenate([x, z * h], -1), node_emb, uw, ub, cheb_k))
    return r * h + (1.0 - r) * hc


def adcrnn_step_ref(xt, init_state, node_emb, layer_raw_params, *, dim_out, cheb_k):
    current = xt
    hiddens = []
    for i, (gw, gb, uw, ub) in enumerate(layer_raw_params):
        current = _cell_ref(current, init_state[i], node_emb, gw, gb, uw, ub,
                            cheb_k, dim_out)
        hiddens.append(current)
    return current, hiddens


# ----------------------------------------------------------------------------
if __name__ == "__main__":
    # small config consistent with the module
    B, N = 2, 16
    DIM_IN, DIM_OUT = 2, 32
    CHEB_K, EMBED_DIM = 3, 8
    NUM_LAYERS = 2

    key = jax.random.PRNGKey(0)
    k_x, k_s, k_e, *k_params = jax.random.split(key, 3 + 2 * NUM_LAYERS)

    xt = jax.random.normal(k_x, (B, N, DIM_IN), dtype=jnp.float32)
    init_state = jax.random.normal(k_s, (NUM_LAYERS, B, N, DIM_OUT), dtype=jnp.float32)
    node_embeddings = jax.random.normal(k_e, (N, EMBED_DIM), dtype=jnp.float32)

    layer_raw_params = []
    for i in range(NUM_LAYERS):
        din = DIM_IN if i == 0 else DIM_OUT
        kg, ku = jax.random.split(k_params[i], 2)
        gw, gb = init_agcn_params(kg, din + DIM_OUT, 2 * DIM_OUT, CHEB_K)
        uw, ub = init_agcn_params(ku, din + DIM_OUT, DIM_OUT, CHEB_K)
        layer_raw_params.append((gw, gb, uw, ub))

    out, hiddens = adcrnn_step_forward(
        xt, init_state, node_embeddings, layer_raw_params,
        dim_in=DIM_IN, dim_out=DIM_OUT, cheb_k=CHEB_K)
    out = jax.block_until_ready(out)
    hiddens = [jax.block_until_ready(h) for h in hiddens]

    # verify against plain-JAX transcription of the PyTorch forward
    out_ref, hiddens_ref = adcrnn_step_ref(
        xt, init_state, node_embeddings, layer_raw_params,
        dim_out=DIM_OUT, cheb_k=CHEB_K)
    assert out.shape == (B, N, DIM_OUT)
    assert len(hiddens) == NUM_LAYERS
    for h, hr in zip(hiddens, hiddens_ref):
        assert jnp.allclose(h, hr, rtol=1e-4, atol=1e-4)
    assert jnp.allclose(out, out_ref, rtol=1e-4, atol=1e-4)

    print("KERNEL_OK")
</pallas_src>

<mosaic_0001>
module attributes {stable_mosaic.version = 11 : i64} {
  func.func @_adcrnn_step_kernel(%arg0: i32, %arg1: memref<16x8xf32, #tpu.memory_space<vmem>>, %arg2: memref<32x2xf32, #tpu.memory_space<vmem>>, %arg3: memref<2x32x32xf32, #tpu.memory_space<vmem>>, %arg4: memref<2x64x288xf32, #tpu.memory_space<vmem>>, %arg5: memref<2x1x96xf32, #tpu.memory_space<vmem>>, %arg6: memref<2x16x64xf32, #tpu.memory_space<vmem>>) attributes {dimension_semantics = [#tpu.dimension_semantics<arbitrary>], iteration_bounds = array<i64: 1>, scalar_prefetch = 0 : i64, scratch_operands = 0 : i64, tpu.core_type = #tpu.core_type<tc>, window_params = [{pipeline_mode = #tpu.pipeline_mode<synchronous>, transform_indices = @transform_0, window_bounds = array<i64: 16, 8>}, {pipeline_mode = #tpu.pipeline_mode<synchronous>, transform_indices = @transform_1, window_bounds = array<i64: 32, 2>}, {pipeline_mode = #tpu.pipeline_mode<synchronous>, transform_indices = @transform_2, window_bounds = array<i64: 2, 32, 32>}, {pipeline_mode = #tpu.pipeline_mode<synchronous>, transform_indices = @transform_3, window_bounds = array<i64: 2, 64, 288>}, {pipeline_mode = #tpu.pipeline_mode<synchronous>, transform_indices = @transform_4, window_bounds = array<i64: 2, 1, 96>}, {pipeline_mode = #tpu.pipeline_mode<synchronous>, transform_indices = @transform_5, window_bounds = array<i64: 2, 16, 64>}]} {
    %c0 = arith.constant 0 : index
    %c0_0 = arith.constant 0 : index
    %0 = vector.load %arg1[%c0, %c0_0] : memref<16x8xf32, #tpu.memory_space<vmem>>, vector<16x8xf32>
    %1 = tpu.transpose %0, [1, 0] : vector<16x8xf32> -> vector<8x16xf32>
    %cst = arith.constant dense<0.000000e+00> : vector<16x16xf32>
    %2 = tpu.matmul %0, %1, %cst {dimension_numbers = #tpu.dot_dimension_numbers<[1], [0], [0], [1], [0, 0, 1, 1], [], []>} : vector<16x8xf32>, vector<8x16xf32>, vector<16x16xf32> -> vector<16x16xf32>
    %cst_1 = arith.constant 0.000000e+00 : f32
    %3 = vector.broadcast %cst_1 : f32 to vector<16x16xf32>
    %4 = arith.maximumf %2, %3 : vector<16x16xf32>
    %cst_2 = arith.constant dense<0xFF800000> : vector<16xf32>
    %5 = vector.multi_reduction <maximumf>, %4, %cst_2 [1] : vector<16x16xf32> to vector<16xf32>
    %6 = vector.shape_cast %5 : vector<16xf32> to vector<16x1xf32>
    %7 = vector.broadcast %6 : vector<16x1xf32> to vector<16x16xf32>
    %8 = arith.subf %4, %7 : vector<16x16xf32>
    %9 = math.exp %8 : vector<16x16xf32>
    %cst_3 = arith.constant dense<0.000000e+00> : vector<16xf32>
    %10 = vector.multi_reduction <add>, %9, %cst_3 [1] : vector<16x16xf32> to vector<16xf32>
    %11 = vector.shape_cast %10 : vector<16xf32> to vector<16x1xf32>
    %12 = vector.broadcast %11 : vector<16x1xf32> to vector<16x16xf32>
    %13 = arith.divf %9, %12 : vector<16x16xf32>
    %14 = tpu.iota {dimensions = array<i32: 0>} : vector<16x16xi32>
    %15 = tpu.iota {dimensions = array<i32: 1>} : vector<16x16xi32>
    %16 = arith.cmpi eq, %14, %15 : vector<16x16xi32>
    %17 = arith.extui %16 : vector<16x16xi1> to vector<16x16xi32>
    %18 = arith.sitofp %17 : vector<16x16xi32> to vector<16x16xf32>
    %cst_4 = arith.constant dense<0.000000e+00> : vector<16x16xf32>
    %19 = tpu.matmul %13, %13, %cst_4 {dimension_numbers = #tpu.dot_dimension_numbers<[1], [0], [0], [1], [0, 0, 1, 1], [], []>} : vector<16x16xf32>, vector<16x16xf32>, vector<16x16xf32> -> vector<16x16xf32>
    %cst_5 = arith.constant 2.000000e+00 : f32
    %20 = vector.broadcast %cst_5 : f32 to vector<16x16xf32>
    %21 = arith.mulf %20, %19 : vector<16x16xf32>
    %22 = arith.subf %21, %18 : vector<16x16xf32>
    %c0_6 = arith.constant 0 : index
    %c0_7 = arith.constant 0 : index
    %23 = vector.load %arg2[%c0_6, %c0_7] : memref<32x2xf32, #tpu.memory_space<vmem>>, vector<32x2xf32>
    %c0_8 = arith.constant 0 : index
    %c0_9 = arith.constant 0 : index
    %c0_10 = arith.constant 0 : index
    %24 = vector.load %arg4[%c0_8, %c0_9, %c0_10] : memref<2x64x288xf32, #tpu.memory_space<vmem>>, vector<1x64x288xf32>
    %25 = vector.shape_cast %24 : vector<1x64x288xf32> to vector<64x288xf32>
    %26 = vector.extract_strided_slice %25 {offsets = [0, 0], sizes = [34, 192], strides = [1, 1]} : vector<64x288xf32> to vector<34x192xf32>
    %27 = vector.extract_strided_slice %25 {offsets = [0, 192], sizes = [34, 96], strides = [1, 1]} : vector<64x288xf32> to vector<34x96xf32>
    %c0_11 = arith.constant 0 : index
    %c0_12 = arith.constant 0 : index
    %c0_13 = arith.constant 0 : index
    %28 = vector.load %arg5[%c0_11, %c0_12, %c0_13] : memref<2x1x96xf32, #tpu.memory_space<vmem>>, vector<1x1x96xf32>
    %29 = vector.shape_cast %28 : vector<1x1x96xf32> to vector<1x96xf32>
    %30 = vector.extract_strided_slice %29 {offsets = [0, 0], sizes = [1, 64], strides = [1, 1]} : vector<1x96xf32> to vector<1x64xf32>
    %31 = vector.extract_strided_slice %29 {offsets = [0, 64], sizes = [1, 32], strides = [1, 1]} : vector<1x96xf32> to vector<1x32xf32>
    %c0_14 = arith.constant 0 : index
    %c0_15 = arith.constant 0 : index
    %c0_16 = arith.constant 0 : index
    %32 = vector.load %arg3[%c0_14, %c0_15, %c0_16] : memref<2x32x32xf32, #tpu.memory_space<vmem>>, vector<1x32x32xf32>
    %33 = vector.shape_cast %32 : vector<1x32x32xf32> to vector<32x32xf32>
    %34 = tpu.concatenate %23, %33 in 1 : vector<32x2xf32>, vector<32x32xf32> -> vector<32x34xf32>
    %cst_17 = arith.constant dense<0.000000e+00> : vector<32x192xf32>
    %35 = tpu.matmul %34, %26, %cst_17 {dimension_numbers = #tpu.dot_dimension_numbers<[1], [0], [0], [1], [0, 0, 1, 1], [], []>} : vector<32x34xf32>, vector<34x192xf32>, vector<32x192xf32> -> vector<32x192xf32>
    %36 = vector.extract_strided_slice %35 {offsets = [0, 0], sizes = [32, 64], strides = [1, 1]} : vector<32x192xf32> to vector<32x64xf32>
    %37 = vector.extract_strided_slice %35 {offsets = [0, 64], sizes = [32, 64], strides = [1, 1]} : vector<32x192xf32> to vector<32x64xf32>
    %38 = vector.extract_strided_slice %37 {offsets = [0, 0], sizes = [16, 64], strides = [1, 1]} : vector<32x64xf32> to vector<16x64xf32>
    %39 = vector.extract_strided_slice %37 {offsets = [16, 0], sizes = [16, 64], strides = [1, 1]} : vector<32x64xf32> to vector<16x64xf32>
    %40 = tpu.concatenate %38, %39 in 1 : vector<16x64xf32>, vector<16x64xf32> -> vector<16x128xf32>
    %cst_18 = arith.constant dense<0.000000e+00> : vector<16x128xf32>
    %41 = tpu.matmul %13, %40, %cst_18 {dimension_numbers = #tpu.dot_dimension_numbers<[1], [0], [0], [1], [0, 0, 1, 1], [], []>} : vector<16x16xf32>, vector<16x128xf32>, vector<16x128xf32> -> vector<16x128xf32>
    %42 = vector.extract_strided_slice %35 {offsets = [0, 128], sizes = [32, 64], strides = [1, 1]} : vector<32x192xf32> to vector<32x64xf32>
    %43 = vector.extract_strided_slice %42 {offsets = [0, 0], sizes = [16, 64], strides = [1, 1]} : vector<32x64xf32> to vector<16x64xf32>
    %44 = vector.extract_strided_slice %42 {offsets = [16, 0], sizes = [16, 64], strides = [1, 1]} : vector<32x64xf32> to vector<16x64xf32>
    %45 = tpu.concatenate %43, %44 in 1 : vector<16x64xf32>, vector<16x64xf32> -> vector<16x128xf32>
    %cst_19 = arith.constant dense<0.000000e+00> : vector<16x128xf32>
    %46 = tpu.matmul %22, %45, %cst_19 {dimension_numbers = #tpu.dot_dimension_numbers<[1], [0], [0], [1], [0, 0, 1, 1], [], []>} : vector<16x16xf32>, vector<16x128xf32>, vector<16x128xf32> -> vector<16x128xf32>
    %47 = arith.addf %41, %46 : vector<16x128xf32>
    %48 = vector.extract_strided_slice %47 {offsets = [0, 0], sizes = [16, 64], strides = [1, 1]} : vector<16x128xf32> to vector<16x64xf32>
    %49 = vector.extract_strided_slice %47 {offsets = [0, 64], sizes = [16, 64], strides = [1, 1]} : vector<16x128xf32> to vector<16x64xf32>
    %50 = tpu.concatenate %48, %49 in 0 : vector<16x64xf32>, vector<16x64xf32> -> vector<32x64xf32>
    %51 = arith.addf %36, %50 : vector<32x64xf32>
    %52 = vector.broadcast %30 : vector<1x64xf32> to vector<32x64xf32>
    %53 = arith.addf %51, %52 : vector<32x64xf32>
    %54 = arith.negf %53 : vector<32x64xf32>
    %55 = math.exp %54 : vector<32x64xf32>
    %cst_20 = arith.constant 1.000000e+00 : f32
    %56 = vector.broadcast %cst_20 : f32 to vector<32x64xf32>
    %57 = arith.addf %56, %55 : vector<32x64xf32>
    %58 = arith.divf %56, %57 : vector<32x64xf32>
    %59 = vector.extract_strided_slice %58 {offsets = [0, 0], sizes = [32, 32], strides = [1, 1]} : vector<32x64xf32> to vector<32x32xf32>
    %60 = vector.extract_strided_slice %58 {offsets = [0, 32], sizes = [32, 32], strides = [1, 1]} : vector<32x64xf32> to vector<32x32xf32>
    %61 = arith.mulf %59, %33 : vector<32x32xf32>
    %62 = tpu.concatenate %23, %61 in 1 : vector<32x2xf32>, vector<32x32xf32> -> vector<32x34xf32>
    %cst_21 = arith.constant dense<0.000000e+00> : vector<32x96xf32>
    %63 = tpu.matmul %62, %27, %cst_21 {dimension_numbers = #tpu.dot_dimension_numbers<[1], [0], [0], [1], [0, 0, 1, 1], [], []>} : vector<32x34xf32>, vector<34x96xf32>, vector<32x96xf32> -> vector<32x96xf32>
    %64 = vector.extract_strided_slice %63 {offsets = [0, 0], sizes = [32, 32], strides = [1, 1]} : vector<32x96xf32> to vector<32x32xf32>
    %65 = vector.extract_strided_slice %63 {offsets = [0, 32], sizes = [32, 32], strides = [1, 1]} : vector<32x96xf32> to vector<32x32xf32>
    %66 = vector.extract_strided_slice %65 {offsets = [0, 0], sizes = [16, 32], strides = [1, 1]} : vector<32x32xf32> to vector<16x32xf32>
    %67 = vector.extract_strided_slice %65 {offsets = [16, 0], sizes = [16, 32], strides = [1, 1]} : vector<32x32xf32> to vector<16x32xf32>
    %68 = tpu.concatenate %66, %67 in 1 : vector<16x32xf32>, vector<16x32xf32> -> vector<16x64xf32>
    %cst_22 = arith.constant dense<0.000000e+00> : vector<16x64xf32>
    %69 = tpu.matmul %13, %68, %cst_22 {dimension_numbers = #tpu.dot_dimension_numbers<[1], [0], [0], [1], [0, 0, 1, 1], [], []>} : vector<16x16xf32>, vector<16x64xf32>, vector<16x64xf32> -> vector<16x64xf32>
    %70 = vector.extract_strided_slice %63 {offsets = [0, 64], sizes = [32, 32], strides = [1, 1]} : vector<32x96xf32> to vector<32x32xf32>
    %71 = vector.extract_strided_slice %70 {offsets = [0, 0], sizes = [16, 32], strides = [1, 1]} : vector<32x32xf32> to vector<16x32xf32>
    %72 = vector.extract_strided_slice %70 {offsets = [16, 0], sizes = [16, 32], strides = [1, 1]} : vector<32x32xf32> to vector<16x32xf32>
    %73 = tpu.concatenate %71, %72 in 1 : vector<16x32xf32>, vector<16x32xf32> -> vector<16x64xf32>
    %cst_23 = arith.constant dense<0.000000e+00> : vector<16x64xf32>
    %74 = tpu.matmul %22, %73, %cst_23 {dimension_numbers = #tpu.dot_dimension_numbers<[1], [0], [0], [1], [0, 0, 1, 1], [], []>} : vector<16x16xf32>, vector<16x64xf32>, vector<16x64xf32> -> vector<16x64xf32>
    %75 = arith.addf %69, %74 : vector<16x64xf32>
    %76 = vector.extract_strided_slice %75 {offsets = [0, 0], sizes = [16, 32], strides = [1, 1]} : vector<16x64xf32> to vector<16x32xf32>
    %77 = vector.extract_strided_slice %75 {offsets = [0, 32], sizes = [16, 32], strides = [1, 1]} : vector<16x64xf32> to vector<16x32xf32>
    %78 = tpu.concatenate %76, %77 in 0 : vector<16x32xf32>, vector<16x32xf32> -> vector<32x32xf32>
    %79 = arith.addf %64, %78 : vector<32x32xf32>
    %80 = vector.broadcast %31 : vector<1x32xf32> to vector<32x32xf32>
    %81 = arith.addf %79, %80 : vector<32x32xf32>
    %82 = math.tanh %81 : vector<32x32xf32>
    %83 = arith.mulf %60, %33 : vector<32x32xf32>
    %cst_24 = arith.constant 1.000000e+00 : f32
    %84 = vector.broadcast %cst_24 : f32 to vector<32x32xf32>
    %85 = arith.subf %84, %60 : vector<32x32xf32>
    %86 = arith.mulf %85, %82 : vector<32x32xf32>
    %87 = arith.addf %83, %86 : vector<32x32xf32>
    %88 = vector.extract_strided_slice %87 {offsets = [0, 0], sizes = [16, 32], strides = [1, 1]} : vector<32x32xf32> to vector<16x32xf32>
    %89 = vector.extract_strided_slice %87 {offsets = [16, 0], sizes = [16, 32], strides = [1, 1]} : vector<32x32xf32> to vector<16x32xf32>
    %90 = tpu.concatenate %88, %89 in 1 : vector<16x32xf32>, vector<16x32xf32> -> vector<16x64xf32>
    %c0_25 = arith.constant 0 : index
    %c0_26 = arith.constant 0 : index
    %c0_27 = arith.constant 0 : index
    %91 = vector.load %arg6[%c0_25, %c0_26, %c0_27] : memref<2x16x64xf32, #tpu.memory_space<vmem>>, vector<1x16x64xf32>
    %92 = vector.shape_cast %91 : vector<1x16x64xf32> to vector<16x64xf32>
    %93 = vector.shape_cast %90 : vector<16x64xf32> to vector<1x16x64xf32>
    tpu.vector_store %arg6[%c0_25, %c0_26, %c0_27], %93 {strides = array<i32>} : memref<2x16x64xf32, #tpu.memory_space<vmem>>, vector<1x16x64xf32>,
    %c1 = arith.constant 1 : index
    %c0_28 = arith.constant 0 : index
    %c0_29 = arith.constant 0 : index
    %94 = vector.load %arg4[%c1, %c0_28, %c0_29] : memref<2x64x288xf32, #tpu.memory_space<vmem>>, vector<1x64x288xf32>
    %95 = vector.shape_cast %94 : vector<1x64x288xf32> to vector<64x288xf32>
    %96 = vector.extract_strided_slice %95 {offsets = [0, 0], sizes = [64, 192], strides = [1, 1]} : vector<64x288xf32> to vector<64x192xf32>
    %97 = vector.extract_strided_slice %95 {offsets = [0, 192], sizes = [64, 96], strides = [1, 1]} : vector<64x288xf32> to vector<64x96xf32>
    %c1_30 = arith.constant 1 : index
    %c0_31 = arith.constant 0 : index
    %c0_32 = arith.constant 0 : index
    %98 = vector.load %arg5[%c1_30, %c0_31, %c0_32] : memref<2x1x96xf32, #tpu.memory_space<vmem>>, vector<1x1x96xf32>
    %99 = vector.shape_cast %98 : vector<1x1x96xf32> to vector<1x96xf32>
    %100 = vector.extract_strided_slice %99 {offsets = [0, 0], sizes = [1, 64], strides = [1, 1]} : vector<1x96xf32> to vector<1x64xf32>
    %101 = vector.extract_strided_slice %99 {offsets = [0, 64], sizes = [1, 32], strides = [1, 1]} : vector<1x96xf32> to vector<1x32xf32>
    %c1_33 = arith.constant 1 : index
    %c0_34 = arith.constant 0 : index
    %c0_35 = arith.constant 0 : index
    %102 = vector.load %arg3[%c1_33, %c0_34, %c0_35] : memref<2x32x32xf32, #tpu.memory_space<vmem>>, vector<1x32x32xf32>
    %103 = vector.shape_cast %102 : vector<1x32x32xf32> to vector<32x32xf32>
    %104 = tpu.concatenate %87, %103 in 1 : vector<32x32xf32>, vector<32x32xf32> -> vector<32x64xf32>
    %cst_36 = arith.constant dense<0.000000e+00> : vector<32x192xf32>
    %105 = tpu.matmul %104, %96, %cst_36 {dimension_numbers = #tpu.dot_dimension_numbers<[1], [0], [0], [1], [0, 0, 1, 1], [], []>} : vector<32x64xf32>, vector<64x192xf32>, vector<32x192xf32> -> vector<32x192xf32>
    %106 = vector.extract_strided_slice %105 {offsets = [0, 0], sizes = [32, 64], strides = [1, 1]} : vector<32x192xf32> to vector<32x64xf32>
    %107 = vector.extract_strided_slice %105 {offsets = [0, 64], sizes = [32, 64], strides = [1, 1]} : vector<32x192xf32> to vector<32x64xf32>
    %108 = vector.extract_strided_slice %107 {offsets = [0, 0], sizes = [16, 64], strides = [1, 1]} : vector<32x64xf32> to vector<16x64xf32>
    %109 = vector.extract_strided_slice %107 {offsets = [16, 0], sizes = [16, 64], strides = [1, 1]} : vector<32x64xf32> to vector<16x64xf32>
    %110 = tpu.concatenate %108, %109 in 1 : vector<16x64xf32>, vector<16x64xf32> -> vector<16x128xf32>
    %cst_37 = arith.constant dense<0.000000e+00> : vector<16x128xf32>
    %111 = tpu.matmul %13, %110, %cst_37 {dimension_numbers = #tpu.dot_dimension_numbers<[1], [0], [0], [1], [0, 0, 1, 1], [], []>} : vector<16x16xf32>, vector<16x128xf32>, vector<16x128xf32> -> vector<16x128xf32>
    %112 = vector.extract_strided_slice %105 {offsets = [0, 128], sizes = [32, 64], strides = [1, 1]} : vector<32x192xf32> to vector<32x64xf32>
    %113 = vector.extract_strided_slice %112 {offsets = [0, 0], sizes = [16, 64], strides = [1, 1]} : vector<32x64xf32> to vector<16x64xf32>
    %114 = vector.extract_strided_slice %112 {offsets = [16, 0], sizes = [16, 64], strides = [1, 1]} : vector<32x64xf32> to vector<16x64xf32>
    %115 = tpu.concatenate %113, %114 in 1 : vector<16x64xf32>, vector<16x64xf32> -> vector<16x128xf32>
    %cst_38 = arith.constant dense<0.000000e+00> : vector<16x128xf32>
    %116 = tpu.matmul %22, %115, %cst_38 {dimension_numbers = #tpu.dot_dimension_numbers<[1], [0], [0], [1], [0, 0, 1, 1], [], []>} : vector<16x16xf32>, vector<16x128xf32>, vector<16x128xf32> -> vector<16x128xf32>
    %117 = arith.addf %111, %116 : vector<16x128xf32>
    %118 = vector.extract_strided_slice %117 {offsets = [0, 0], sizes = [16, 64], strides = [1, 1]} : vector<16x128xf32> to vector<16x64xf32>
    %119 = vector.extract_strided_slice %117 {offsets = [0, 64], sizes = [16, 64], strides = [1, 1]} : vector<16x128xf32> to vector<16x64xf32>
    %120 = tpu.concatenate %118, %119 in 0 : vector<16x64xf32>, vector<16x64xf32> -> vector<32x64xf32>
    %121 = arith.addf %106, %120 : vector<32x64xf32>
    %122 = vector.broadcast %100 : vector<1x64xf32> to vector<32x64xf32>
    %123 = arith.addf %121, %122 : vector<32x64xf32>
    %124 = arith.negf %123 : vector<32x64xf32>
    %125 = math.exp %124 : vector<32x64xf32>
    %cst_39 = arith.constant 1.000000e+00 : f32
    %126 = vector.broadcast %cst_39 : f32 to vector<32x64xf32>
    %127 = arith.addf %126, %125 : vector<32x64xf32>
    %128 = arith.divf %126, %127 : vector<32x64xf32>
    %129 = vector.extract_strided_slice %128 {offsets = [0, 0], sizes = [32, 32], strides = [1, 1]} : vector<32x64xf32> to vector<32x32xf32>
    %130 = vector.extract_strided_slice %128 {offsets = [0, 32], sizes = [32, 32], strides = [1, 1]} : vector<32x64xf32> to vector<32x32xf32>
    %131 = arith.mulf %129, %103 : vector<32x32xf32>
    %132 = tpu.concatenate %87, %131 in 1 : vector<32x32xf32>, vector<32x32xf32> -> vector<32x64xf32>
    %cst_40 = arith.constant dense<0.000000e+00> : vector<32x96xf32>
    %133 = tpu.matmul %132, %97, %cst_40 {dimension_numbers = #tpu.dot_dimension_numbers<[1], [0], [0], [1], [0, 0, 1, 1], [], []>} : vector<32x64xf32>, vector<64x96xf32>, vector<32x96xf32> -> vector<32x96xf32>
    %134 = vector.extract_strided_slice %133 {offsets = [0, 0], sizes = [32, 32], strides = [1, 1]} : vector<32x96xf32> to vector<32x32xf32>
    %135 = vector.extract_strided_slice %133 {offsets = [0, 32], sizes = [32, 32], strides = [1, 1]} : vector<32x96xf32> to vector<32x32xf32>
    %136 = vector.extract_strided_slice %135 {offsets = [0, 0], sizes = [16, 32], strides = [1, 1]} : vector<32x32xf32> to vector<16x32xf32>
    %137 = vector.extract_strided_slice %135 {offsets = [16, 0], sizes = [16, 32], strides = [1, 1]} : vector<32x32xf32> to vector<16x32xf32>
    %138 = tpu.concatenate %136, %137 in 1 : vector<16x32xf32>, vector<16x32xf32> -> vector<16x64xf32>
    %cst_41 = arith.constant dense<0.000000e+00> : vector<16x64xf32>
    %139 = tpu.matmul %13, %138, %cst_41 {dimension_numbers = #tpu.dot_dimension_numbers<[1], [0], [0], [1], [0, 0, 1, 1], [], []>} : vector<16x16xf32>, vector<16x64xf32>, vector<16x64xf32> -> vector<16x64xf32>
    %140 = vector.extract_strided_slice %133 {offsets = [0, 64], sizes = [32, 32], strides = [1, 1]} : vector<32x96xf32> to vector<32x32xf32>
    %141 = vector.extract_strided_slice %140 {offsets = [0, 0], sizes = [16, 32], strides = [1, 1]} : vector<32x32xf32> to vector<16x32xf32>
    %142 = vector.extract_strided_slice %140 {offsets = [16, 0], sizes = [16, 32], strides = [1, 1]} : vector<32x32xf32> to vector<16x32xf32>
    %143 = tpu.concatenate %141, %142 in 1 : vector<16x32xf32>, vector<16x32xf32> -> vector<16x64xf32>
    %cst_42 = arith.constant dense<0.000000e+00> : vector<16x64xf32>
    %144 = tpu.matmul %22, %143, %cst_42 {dimension_numbers = #tpu.dot_dimension_numbers<[1], [0], [0], [1], [0, 0, 1, 1], [], []>} : vector<16x16xf32>, vector<16x64xf32>, vector<16x64xf32> -> vector<16x64xf32>
    %145 = arith.addf %139, %144 : vector<16x64xf32>
    %146 = vector.extract_strided_slice %145 {offsets = [0, 0], sizes = [16, 32], strides = [1, 1]} : vector<16x64xf32> to vector<16x32xf32>
    %147 = vector.extract_strided_slice %145 {offsets = [0, 32], sizes = [16, 32], strides = [1, 1]} : vector<16x64xf32> to vector<16x32xf32>
    %148 = tpu.concatenate %146, %147 in 0 : vector<16x32xf32>, vector<16x32xf32> -> vector<32x32xf32>
    %149 = arith.addf %134, %148 : vector<32x32xf32>
    %150 = vector.broadcast %101 : vector<1x32xf32> to vector<32x32xf32>
    %151 = arith.addf %149, %150 : vector<32x32xf32>
    %152 = math.tanh %151 : vector<32x32xf32>
    %153 = arith.mulf %130, %103 : vector<32x32xf32>
    %cst_43 = arith.constant 1.000000e+00 : f32
    %154 = vector.broadcast %cst_43 : f32 to vector<32x32xf32>
    %155 = arith.subf %154, %130 : vector<32x32xf32>
    %156 = arith.mulf %155, %152 : vector<32x32xf32>
    %157 = arith.addf %153, %156 : vector<32x32xf32>
    %158 = vector.extract_strided_slice %157 {offsets = [0, 0], sizes = [16, 32], strides = [1, 1]} : vector<32x32xf32> to vector<16x32xf32>
    %159 = vector.extract_strided_slice %157 {offsets = [16, 0], sizes = [16, 32], strides = [1, 1]} : vector<32x32xf32> to vector<16x32xf32>
    %160 = tpu.concatenate %158, %159 in 1 : vector<16x32xf32>, vector<16x32xf32> -> vector<16x64xf32>
    %c1_44 = arith.constant 1 : index
    %c0_45 = arith.constant 0 : index
    %c0_46 = arith.constant 0 : index
    %161 = vector.load %arg6[%c1_44, %c0_45, %c0_46] : memref<2x16x64xf32, #tpu.memory_space<vmem>>, vector<1x16x64xf32>
    %162 = vector.shape_cast %161 : vector<1x16x64xf32> to vector<16x64xf32>
    %163 = vector.shape_cast %160 : vector<16x64xf32> to vector<1x16x64xf32>
    tpu.vector_store %arg6[%c1_44, %c0_45, %c0_46], %163 {strides = array<i32>} : memref<2x16x64xf32, #tpu.memory_space<vmem>>, vector<1x16x64xf32>,
    return
  }
  func.func @transform_0(%arg0: i32) -> (i32, i32) {
    %c0_i32 = arith.constant 0 : i32
    %c0_i32_0 = arith.constant 0 : i32
    %c0_i32_1 = arith.constant 0 : i32
    return %c0_i32, %c0_i32_0 : i32, i32
  }
  func.func @transform_1(%arg0: i32) -> (i32, i32) {
    %c0_i32 = arith.constant 0 : i32
    %c0_i32_0 = arith.constant 0 : i32
    %c0_i32_1 = arith.constant 0 : i32
    return %c0_i32, %c0_i32_0 : i32, i32
  }
  func.func @transform_2(%arg0: i32) -> (i32, i32, i32) {
    %c0_i32 = arith.constant 0 : i32
    %c0_i32_0 = arith.constant 0 : i32
    %c0_i32_1 = arith.constant 0 : i32
    %c0_i32_2 = arith.constant 0 : i32
    return %c0_i32, %c0_i32_0, %c0_i32_1 : i32, i32, i32
  }
  func.func @transform_3(%arg0: i32) -> (i32, i32, i32) {
    %c0_i32 = arith.constant 0 : i32
    %c0_i32_0 = arith.constant 0 : i32
    %c0_i32_1 = arith.constant 0 : i32
    %c0_i32_2 = arith.constant 0 : i32
    return %c0_i32, %c0_i32_0, %c0_i32_1 : i32, i32, i32
  }
  func.func @transform_4(%arg0: i32) -> (i32, i32, i32) {
    %c0_i32 = arith.constant 0 : i32
    %c0_i32_0 = arith.constant 0 : i32
    %c0_i32_1 = arith.constant 0 : i32
    %c0_i32_2 = arith.constant 0 : i32
    return %c0_i32, %c0_i32_0, %c0_i32_1 : i32, i32, i32
  }
  func.func @transform_5(%arg0: i32) -> (i32, i32, i32) {
    %c0_i32 = arith.constant 0 : i32
    %c0_i32_0 = arith.constant 0 : i32
    %c0_i32_1 = arith.constant 0 : i32
    %c0_i32_2 = arith.constant 0 : i32
    return %c0_i32, %c0_i32_0, %c0_i32_1 : i32, i32, i32
  }
}

</mosaic_0001>

<bundles_post_ra>
// kernel: tpu_custom_call.1
= control target key start
LH: loop header
LB: loop body
LE: loop exit
PB: predicated region body
PF: predicated region fallthrough
CT: control target
= control target key end

     0   :  { %10 = vsyncpa [#allocation3], 0  ;;  %s2753_s0 = inlined_call_operand.vmem [shape: f32[16,8], index: 0, kind: input, shape index: {}]   ;;  %s2754_s1 = inlined_call_operand.vmem [shape: f32[32,2], index: 1, kind: input, shape index: {}]   ;;  %s2755_s2 = inlined_call_operand.hbm [shape: f32[2,32,32], index: 2, kind: input, shape index: {}]   ;;  %s2756_s3 = inlined_call_operand.hbm [shape: f32[2,64,288], index: 3, kind: input, shape index: {}]   ;;  %s2757_s4 = inlined_call_operand.vmem [shape: f32[2,1,96], index: 4, kind: input, shape index: {}]   ;;  %s2758_s5 = inlined_call_operand.hbm [shape: f32[2,16,64], index: 5, kind: output, shape index: {}]  }
   0x1   :  { %11 = vsyncpa [#allocation6], 0 }
   0x2   :  { %12 = vsyncpa [#allocation4], 0  ;;  %s2229_s18 = smov [#allocation2]  }
   0x3   :  { %s22_s19 = sshll.u32 %s2229_s18, 4  ;;  %s23_s19 = int_to_ptr.vmem [resolvable:$true] %s22_s19 }
   0x4   :  { %s2171_s20 = scalar_lea.vmem %s23_s19, 1024  ;;  %p2176_p1 = scmp.lt.s32.totalorder %s23_s19, %s23_s19 }
   0x5   :  { %p2172_p0 = scmp.ne.s32.totalorder %s23_s19, %s2171_s20  ;;  %p2177_p2 = scmp.lt.s32.totalorder %s2171_s20, %s2171_s20 }
   0x7   :  { %p2178_p3 = por %p2177_p2, %p2176_p1 }
   0x9   :  { %p2179_p4 = pnand %p2178_p3, %p2172_p0 }
   0xb   :  { %2182 = shalt.err (!%p2179_p4)
}
   0xc   :  { %s2230_s21 = smov 128   ;;  %s2231_s22 = smov 8  }
   0xd   :  { %28 = dma.hbm_to_vmem [thread:$0]  %s2755_s2, 1024, %s23_s19, [#allocation3], %s2230_s21, %s2230_s21, %s2231_s22  }
   0xe   :  { %s2232_s25 = smov [#allocation5]  }
   0xf   :  { %s34_s26 = sshll.u32 %s2232_s25, 4  ;;  %s35_s26 = int_to_ptr.vmem [resolvable:$true] %s34_s26 }
  0x10   :  { %s2191_s27 = scalar_lea.vmem %s35_s26, 6144  ;;  %p2196_p6 = scmp.lt.s32.totalorder %s35_s26, %s35_s26 }
  0x11   :  { %p2192_p5 = scmp.ne.s32.totalorder %s35_s26, %s2191_s27  ;;  %p2197_p7 = scmp.lt.s32.totalorder %s2191_s27, %s2191_s27 }
  0x13   :  { %p2198_p8 = por %p2197_p7, %p2196_p6 }
  0x15   :  { %p2199_p9 = pnand %p2198_p8, %p2192_p5 }
  0x17   :  { %2202 = shalt.err (!%p2199_p9)
}
  0x18   :  { %s2233_s28 = smov 384   ;;  %s2234_s29 = smov 24  }
  0x19   :  { %40 = dma.hbm_to_vmem [thread:$0]  %s2756_s3, 6144, %s35_s26, [#allocation6], %s2233_s28, %s2233_s28, %s2234_s29  }
  0x1a   :  { %2223 = dma.done.wait [#allocation3], 1024  }
  0x1b   :  { %2224 = vsyncadd [#allocation3], 4294966272 }
  0x1c   :  { %2225 = dma.done.wait [#allocation6], 6144  }
  0x1d   :  { %2226 = vsyncadd [#allocation6], 4294961152  ;;  %vm51_vm0 = vcmask 64512   ;;  %v50_v0 = vld [vmem:[%s2753_s0 + $0x8] sm:$0xff]  ;;  %v49_v1 = vld [vmem:[%s2753_s0] sm:$0xff]  ;;  %vm135_vm1 = vcmask 130048   ;;  %v158_v51 = vlaneseq }
  0x1e   :  { %1987 = vmatprep.subr.msk.mxu0 %vm51_vm0, %v50_v0  ;;  %1991 = vmatprep.mubr.msk.f32.mxu0 %vm51_vm0, %v49_v1  ;;  %v2288_v8 = vld [vmem:[#allocation2] sm:$0xff]  ;;  %s2235_s0 = smov 2   ;;  %v2294_v19 = vld [vmem:[#allocation2 + $0x8] sm:$0xff]  ;;  %v2298_v20 = vld [vmem:[#allocation2 + $0x10] sm:$0xff]  ;;  %vm312_vm2 = vcmask 1041408   ;;  %v2236_v33 = vmov 0.0  }
  0x1f   :  { %1988 = vmatpush3.xpose.msk.msra.mxu0 %vm51_vm0, %v50_v0  ;;  %v2302_v21 = vld [vmem:[#allocation2 + $0x18] sm:$0xff]  ;;  %v2312_v28 = vld [vmem:[#allocation5 + $0x68] sm:$0xff]  ;;  %v270_v29 = vld [vmem:[#allocation5 + $0x60] sm:$0xff]  ;;  %vm294_vm3 = vcmask 15360   ;;  %vm299_vm4 = vcmask 277504   ;;  %v159_v52 = vshrl.u32 %v158_v51, 7 }
  0x20   :  { %1989 = vmatprep.subr.msk.mxu0 %vm51_vm0, %v49_v1  ;;  %v2318_v30 = vld [vmem:[#allocation5 + $0x50] sm:$0xff]  ;;  %v267_v31 = vld [vmem:[#allocation5 + $0x48] sm:$0xff]  ;;  %v2325_v32 = vld [vmem:[#allocation5 + $0x38] sm:$0xff]  ;;  %v162_v53 = vand.u32 127, %v158_v51  ;;  %vm416_vm7 = vcmask 523264   ;;  %s2238_s19 = smov 96  }
  0x21   :  { %v264_v34 = vld [vmem:[#allocation5 + $0x30] sm:$0xff]  ;;  %v2329_v35 = vld [vmem:[#allocation5 + $0x20] sm:$0xff]  ;;  %v261_v36 = vld [vmem:[#allocation5 + $0x18] sm:$0xff]  ;;  %vm800_vm8 = vcmask 261120   ;;  %s2239_s20 = smov 32  }
  0x22   :  { %v2335_v37 = vld [vmem:[%s2754_s1] sm:$0xff]  ;;  %v2337_v40 = vld [vmem:[#allocation5 + $0x8] sm:$0xff]  ;;  %v2355_v46 = vld [vmem:[%s2754_s1 + $0x10] sm:$0xff]  ;;  %vm163_vm5 = vcmp.eq.s32.totalorder %v159_v52, %v162_v53 }
  0x23   :  { %1990 = vmatpush3.xpose.msk.msra.mxu0 %vm51_vm0, %v49_v1  ;;  %v258_v41 = vld [vmem:[#allocation5] sm:$0xff]  ;;  %v2346_v43 = vld [vmem:[%s2754_s1 + $0x8] sm:$0xff]  ;;  %v2364_v48 = vld [vmem:[%s2754_s1 + $0x18] sm:$0xff]  ;;  %v1876_v55 = vsel %vm163_vm5, 1.0, %v2236_v33  ;;  %s2237_s1 = smov 64  }
  0x26   :  { %1992 = vmatmul.mubr.msk.f32.vlgmr.msra.gmra.mxu0 %vm51_vm0, %v50_v0 }
  0xe6   :  { %v1993_v2 = vpop.f32.mrf.mxu0 }
  0xe7   :  { %v134_v3 = vmax.f32 %v1993_v2, 0.0 }
  0xe8   :  { %v124_v4 = vpop.f32.mrf.mxu0 }
  0xe9   :  { %v133_v5 = vmax.f32 %v124_v4, 0.0  ;;  %v139_v6 = vsel %vm135_vm1, %v134_v3, -inf }
  0xea   :  { %140 = vmax.xlane.f32.xlu0 %v139_v6 }
  0xeb   :  { %v136_v7 = vsel %vm135_vm1, %v133_v5, -inf }
  0xee   :  { %137 = vmax.xlane.f32.xlu0 %v136_v7 }
 0x104   :  { %282 = vrot.lane.b32.xlu0 %v2288_v8, %s2235_s0 }
 0x173   :  { %v141_v9 = vpop.xlane.xlu0 %140 }
 0x174   :  { %v143_v10 = vsub.f32 %v134_v3, %v141_v9  ;;  %v160_v3 = vadd.s32 8, %v159_v52 }
 0x176   :  { %v146_v11 = vmul.f32 1.442695, %v143_v10  ;;  %vm164_vm6 = vcmp.eq.s32.totalorder %v160_v3, %v162_v53 }
 0x177   :  { %v138_v12 = vpop.xlane.xlu0 %137  ;;  %v1877_v7 = vsel %vm164_vm6, 1.0, %v2236_v33 }
 0x178   :  { %2107 = vpow2.f32 %v146_v11  ;;  %v142_v13 = vsub.f32 %v133_v5, %v138_v12 }
 0x17a   :  { %v144_v14 = vmul.f32 1.442695, %v142_v13 }
 0x17b   :  { %v283_v38 = vpop.permute.xlu0 %282 }
 0x17c   :  { %2109 = vpow2.f32 %v144_v14  ;;  %v295_v42 = vsel %vm294_vm3, %v2335_v37, %v283_v38 }
 0x185   :  { %v2108_v15 = vpop.eup %2107 }
 0x186   :  { %v151_v16 = vsel %vm135_vm1, %v2108_v15, 0.0 }
 0x187   :  { %152 = vadd.xlane.f32.xlu1 %v151_v16 }
 0x189   :  { %v2110_v17 = vpop.eup %2109 }
 0x18a   :  { %v148_v18 = vsel %vm135_vm1, %v2110_v17, 0.0 }
 0x18b   :  { %149 = vadd.xlane.f32.xlu1 %v148_v18 }
 0x19c   :  { %284 = vrot.lane.b32.xlu1 %v2294_v19, %s2235_s0 }
 0x1a0   :  { %286 = vrot.lane.b32.xlu1 %v2298_v20, %s2235_s0 }
 0x1a4   :  { %288 = vrot.lane.b32.xlu1 %v2302_v21, %s2235_s0 }
 0x210   :  { %v153_v22 = vpop.xlane.xlu1 %152 }
 0x211   :  { %2111 = vrcp.f32 %v153_v22 }
 0x214   :  { %v150_v23 = vpop.xlane.xlu1 %149 }
 0x215   :  { %2113 = vrcp.f32 %v150_v23  ;;  %v2404_v23 = vld [vmem:[%s2757_s4] ss:$0 sm:$0xff] }
 0x218   :  { %v285_v39 = vpop.permute.xlu1 %284 }
 0x219   :  { %v296_v45 = vsel %vm294_vm3, %v2346_v43, %v285_v39 }
 0x21c   :  { %v287_v44 = vpop.permute.xlu1 %286 }
 0x21d   :  { %v297_v47 = vsel %vm294_vm3, %v2355_v46, %v287_v44  ;;  %v266_v44 = vld [vmem:[#allocation5 + $0x40] sm:$0xff] }
 0x21e   :  { %v2112_v24 = vpop.eup %2111 }
 0x21f   :  { %v2306_v25 = vmul.f32 %v2112_v24, %v2108_v15 }
 0x220   :  { %v289_v49 = vpop.permute.xlu1 %288 }
 0x221   :  { %1994 = vmatprep.subr.mxu1 %v2306_v25  ;;  %v298_v50 = vsel %vm294_vm3, %v2364_v48, %v289_v49 }
 0x222   :  { %v2114_v26 = vpop.eup %2113  ;;  %1995 = vmatpush3.msra.mxu1 %v2306_v25 }
 0x223   :  { %v2310_v27 = vmul.f32 %v2114_v26, %v2110_v17 }
 0x225   :  { %1996 = vmatprep.subr.mxu1 %v2310_v27  ;;  %1998 = vmatprep.mubr.msk.f32.mxu1 %vm135_vm1, %v2310_v27 }
 0x226   :  { %1997 = vmatpush3.msra.mxu1 %v2310_v27 }
 0x227   :  { %1999 = vmatmul.mubr.msk.f32.vlgmr.msra.gmra.mxu1 %vm135_vm1, %v2306_v25  ;;  %1880 = vmatprep.subr.msk.mxu1 %vm312_vm2, %v2312_v28 }
 0x228   :  { %1881 = vmatpush1.msk.msra.mxu1 %vm312_vm2, %v270_v29  ;;  %383 = vmatprep.mubr.f32.mxu1 %v2236_v33 }
 0x229   :  { %343 = vmatprep.subr.mxu1 %v2318_v30 }
 0x22a   :  { %344 = vmatpush1.msra.mxu1 %v267_v31  ;;  %v272_v31 = vld [vmem:[#allocation5 + $0x70] sm:$0xff] }
 0x22b   :  { %345 = vmatprep.subr.mxu1 %v2325_v32 }
 0x22c   :  { %346 = vmatpush1.msra.mxu1 %v264_v34 }
 0x22d   :  { %347 = vmatprep.subr.mxu1 %v2329_v35 }
 0x22e   :  { %348 = vmatpush1.msra.mxu1 %v261_v36 }
 0x22f   :  { %349 = vmatprep.subr.mxu1 %v2337_v40 }
 0x230   :  { %350 = vmatpush1.msra.mxu1 %v258_v41  ;;  %v269_v41 = vld [vmem:[#allocation5 + $0x58] sm:$0xff] }
 0x231   :  { %1882 = vmatmul.mubr.msk.f32.vlgmr.msra.gmra.mxu1 %vm299_vm4, %v295_v42 }
 0x232   :  { %389 = vmatprep.mubr.f32.mxu1 %v2236_v33 }
 0x235   :  { %1883 = vmatmul.mubr.msk.f32.gmra.mxu1 %vm299_vm4, %v296_v45  ;;  %v263_v45 = vld [vmem:[#allocation5 + $0x28] sm:$0xff] }
 0x236   :  { %395 = vmatprep.mubr.f32.mxu1 %v2236_v33 }
 0x239   :  { %1884 = vmatmul.mubr.msk.f32.gmra.mxu1 %vm299_vm4, %v297_v47  ;;  %v260_v47 = vld [vmem:[#allocation5 + $0x10] sm:$0xff] }
 0x23a   :  { %401 = vmatprep.mubr.f32.mxu1 %v2236_v33 }
 0x23d   :  { %1885 = vmatmul.mubr.msk.f32.gmra.mxu1 %vm299_vm4, %v298_v50 }
 0x2e7   :  { %v2000_v54 = vpop.f32.mrf.mxu1 }
 0x2e8   :  { %v251_v5 = vmul.f32 2.0, %v2000_v54 }
 0x2e9   :  { %v241_v56 = vpop.f32.mrf.mxu1 }
 0x2ea   :  { %v250_v57 = vmul.f32 2.0, %v241_v56  ;;  %v2389_v11 = vsub.f32 %v251_v5, %v1877_v7 }
 0x2ec   :  { %v2372_v58 = vsub.f32 %v250_v57, %v1876_v55 }
 0x2ee   :  { %2005 = vmatprep.mubr.msk.f32.mxu0 %vm135_vm1, %v2372_v58  ;;  %2035 = vmatprep.mubr.msk.f32.mxu1 %vm135_vm1, %v2372_v58 }
 0x2f1   :  { %v385_v59 = vpop.f32.mrf.mxu1 }
 0x2f3   :  { %v387_v60 = vpop.f32.mrf.mxu1 }
 0x2f5   :  { %v391_v61 = vpop.f32.mrf.mxu1 }
 0x2f7   :  { %v393_v62 = vpop.f32.mrf.mxu1 }
 0x2f9   :  { %v2378_v63 = vpop.f32.mrf.mxu1 }
 0x2fb   :  { %v399_v0 = vpop.f32.mrf.mxu1 }
 0x2fc   :  { %421 = vrot.lane.b32.xlu1 %v399_v0, %s2237_s1 }
 0x2fd   :  { %v2381_v1 = vpop.f32.mrf.mxu1 }
 0x2ff   :  { %v405_v2 = vpop.f32.mrf.mxu1 }
 0x300   :  { %410 = vrot.lane.b32.xlu1 %v385_v59, %s2237_s1  ;;  %423 = vrot.lane.b32.xlu0 %v405_v2, %s2237_s1 }
 0x304   :  { %412 = vrot.lane.b32.xlu0 %v391_v61, %s2237_s1 }
 0x36e   :  { %v422_v4 = vpop.permute.xlu1 %421 }
 0x36f   :  { %v427_v10 = vsel %vm416_vm7, %v387_v60, %v422_v4 }
 0x372   :  { %v424_v6 = vpop.permute.xlu0 %423  ;;  %v411_v12 = vpop.permute.xlu1 %410 }
 0x373   :  { %v428_v9 = vsel %vm416_vm7, %v393_v62, %v424_v6  ;;  %v417_v15 = vsel %vm416_vm7, %v411_v12, %v2378_v63 }
 0x374   :  { %2001 = vmatprep.subr.mxu0 %v428_v9 }
 0x375   :  { %2002 = vmatpush3.msra.mxu0 %v428_v9 }
 0x376   :  { %2003 = vmatprep.subr.mxu0 %v427_v10  ;;  %v413_v13 = vpop.permute.xlu0 %412 }
 0x377   :  { %2004 = vmatpush3.msra.mxu0 %v427_v10  ;;  %v418_v14 = vsel %vm416_vm7, %v413_v13, %v2381_v1 }
 0x378   :  { %2006 = vmatmul.mubr.msk.f32.vlgmr.msra.gmra.mxu0 %vm135_vm1, %v2389_v11  ;;  %2008 = vmatprep.subr.mxu0 %v418_v14 }
 0x379   :  { %2009 = vmatpush3.msra.mxu0 %v418_v14  ;;  %2012 = vmatprep.mubr.msk.f32.mxu0 %vm135_vm1, %v2310_v27 }
 0x37a   :  { %2010 = vmatprep.subr.mxu0 %v417_v15 }
 0x37b   :  { %2011 = vmatpush3.msra.mxu0 %v417_v15 }
 0x37c   :  { %2013 = vmatmul.mubr.msk.f32.vlgmr.msra.gmra.mxu0 %vm135_vm1, %v2306_v25 }
 0x438   :  { %v2007_v16 = vpop.f32.mrf.mxu0 }
 0x43a   :  { %v501_v17 = vpop.f32.mrf.mxu0 }
 0x43c   :  { %v2014_v18 = vpop.f32.mrf.mxu0 }
 0x43d   :  { %v582_v22 = vadd.f32 %v2014_v18, %v2007_v16 }
 0x43e   :  { %v576_v24 = vpop.f32.mrf.mxu0 }
 0x43f   :  { %v594_v26 = vadd.f32 %v582_v22, %v391_v61  ;;  %v577_v29 = vadd.f32 %v576_v24, %v501_v17  ;;  %589 = vrot.lane.b32.xlu1 %v582_v22, %s2237_s1 }
 0x441   :  { %v604_v34 = vadd.f32 %v2404_v23, %v594_v26  ;;  %v593_v36 = vadd.f32 %v577_v29, %v385_v59  ;;  %587 = vrot.lane.b32.xlu0 %v577_v29, %s2237_s1 }
 0x443   :  { %v1892_v38 = vmul.f32 -1.442695, %v604_v34  ;;  %v603_v39 = vadd.f32 %v2404_v23, %v593_v36  ;;  %682 = vrot.lane.b32.xlu1 %v272_v31, %s2237_s1 }
 0x445   :  { %2115 = vpow2.f32 %v1892_v38  ;;  %v1891_v42 = vmul.f32 -1.442695, %v603_v39  ;;  %680 = vrot.lane.b32.xlu0 %v2312_v28, %s2237_s1 }
 0x447   :  { %2117 = vpow2.f32 %v1891_v42  ;;  %678 = vrot.lane.b32.xlu1 %v269_v41, %s2237_s1 }
 0x449   :  { %676 = vrot.lane.b32.xlu0 %v2318_v30, %s2237_s1 }
 0x44b   :  { %674 = vrot.lane.b32.xlu1 %v266_v44, %s2237_s1 }
 0x44d   :  { %672 = vrot.lane.b32.xlu0 %v2325_v32, %s2237_s1 }
 0x44f   :  { %670 = vrot.lane.b32.xlu1 %v263_v45, %s2237_s1 }
 0x451   :  { %668 = vrot.lane.b32.xlu0 %v2329_v35, %s2237_s1 }
 0x452   :  { %v2116_v28 = vpop.eup %2115 }
 0x453   :  { %v620_v49 = vadd.f32 1.0, %v2116_v28  ;;  %666 = vrot.lane.b32.xlu1 %v260_v47, %s2237_s1 }
 0x454   :  { %v2118_v50 = vpop.eup %2117 }
 0x455   :  { %2119 = vrcp.f32 %v620_v49  ;;  %v619_v51 = vadd.f32 1.0, %v2118_v50  ;;  %664 = vrot.lane.b32.xlu0 %v2337_v40, %s2237_s1 }
 0x457   :  { %2121 = vrcp.f32 %v619_v51 }
 0x462   :  { %v2425_v30 = vpop.eup %2119 }
 0x463   :  { %v632_v32 = vmul.f32 %v2425_v30, %v2294_v19 }
 0x464   :  { %v2429_v52 = vpop.eup %2121 }
 0x465   :  { %641 = vrot.lane.b32.xlu1 %v632_v32, %s2235_s0  ;;  %v631_v35 = vmul.f32 %v2429_v52, %v2288_v8 }
 0x467   :  { %639 = vrot.lane.b32.xlu0 %v631_v35, %s2235_s0 }
 0x4b1   :  { %v590_v53 = vpop.permute.xlu1 %589 }
 0x4b2   :  { %v596_v54 = vadd.f32 %v590_v53, %v2381_v1 }
 0x4b3   :  { %v588_v55 = vpop.permute.xlu0 %587 }
 0x4b4   :  { %v606_v40 = vadd.f32 %v2404_v23, %v596_v54  ;;  %v595_v56 = vadd.f32 %v588_v55, %v2378_v63 }
 0x4b5   :  { %v683_v57 = vpop.permute.xlu1 %682 }
 0x4b6   :  { %v1894_v59 = vmul.f32 -1.442695, %v606_v40  ;;  %v605_v60 = vadd.f32 %v2404_v23, %v595_v56 }
 0x4b7   :  { %v681_v61 = vpop.permute.xlu0 %680 }
 0x4b8   :  { %2123 = vpow2.f32 %v1894_v59  ;;  %v1893_v62 = vmul.f32 -1.442695, %v605_v60  ;;  %v688_v0 = vsel %vm416_vm7, %v681_v61, %v683_v57 }
 0x4b9   :  { %v679_v2 = vpop.permute.xlu1 %678  ;;  %2015 = vmatprep.subr.msk.mxu0 %vm312_vm2, %v688_v0 }
 0x4ba   :  { %2125 = vpow2.f32 %v1893_v62  ;;  %2016 = vmatpush3.msk.msra.mxu0 %vm312_vm2, %v688_v0 }
 0x4bb   :  { %v677_v1 = vpop.permute.xlu0 %676 }
 0x4bc   :  { %v687_v3 = vsel %vm416_vm7, %v677_v1, %v679_v2  ;;  %v2507_v1 = vld [vmem:[#allocation5 + $0x170] sm:$0xff] }
 0x4bd   :  { %v675_v4 = vpop.permute.xlu1 %674  ;;  %2017 = vmatprep.subr.mxu0 %v687_v3 }
 0x4be   :  { %2018 = vmatpush3.msra.mxu0 %v687_v3  ;;  %v1070_v3 = vld [vmem:[#allocation5 + $0x168] sm:$0xff] }
 0x4bf   :  { %v673_v63 = vpop.permute.xlu0 %672 }
 0x4c0   :  { %v686_v5 = vsel %vm416_vm7, %v673_v63, %v675_v4  ;;  %v2509_v4 = vld [vmem:[#allocation5 + $0x158] sm:$0xff]  ;;  %v2513_v63 = vld [vmem:[#allocation5 + $0x140] sm:$0xff] }
 0x4c1   :  { %v671_v6 = vpop.permute.xlu1 %670  ;;  %2019 = vmatprep.subr.mxu0 %v686_v5 }
 0x4c2   :  { %2020 = vmatpush3.msra.mxu0 %v686_v5 }
 0x4c3   :  { %v669_v7 = vpop.permute.xlu0 %668 }
 0x4c4   :  { %v685_v9 = vsel %vm416_vm7, %v669_v7, %v671_v6 }
 0x4c5   :  { %v2124_v10 = vpop.eup %2123  ;;  %2021 = vmatprep.subr.mxu0 %v685_v9  ;;  %v667_v14 = vpop.permute.xlu1 %666 }
 0x4c6   :  { %v622_v12 = vadd.f32 1.0, %v2124_v10  ;;  %2022 = vmatpush3.msra.mxu0 %v685_v9 }
 0x4c7   :  { %v2126_v13 = vpop.eup %2125  ;;  %v665_v15 = vpop.permute.xlu0 %664 }
 0x4c8   :  { %2127 = vrcp.f32 %v622_v12  ;;  %v621_v16 = vadd.f32 1.0, %v2126_v13  ;;  %v684_v17 = vsel %vm416_vm7, %v665_v15, %v667_v14  ;;  %v1061_v13 = vld [vmem:[#allocation5 + $0x120] sm:$0xff]  ;;  %v2523_v14 = vld [vmem:[#allocation5 + $0x110] sm:$0xff]  ;;  %v1058_v15 = vld [vmem:[#allocation5 + $0x108] sm:$0xff] }
 0x4c9   :  { %2023 = vmatprep.subr.mxu0 %v684_v17 }
 0x4ca   :  { %2129 = vrcp.f32 %v621_v16  ;;  %2024 = vmatpush3.msra.mxu0 %v684_v17  ;;  %v2526_v16 = vld [vmem:[#allocation5 + $0xf8] sm:$0xff]  ;;  %v1055_v17 = vld [vmem:[#allocation5 + $0xf0] sm:$0xff] }
 0x4d5   :  { %v2446_v18 = vpop.eup %2127 }
 0x4d6   :  { %v634_v22 = vmul.f32 %v2446_v18, %v2302_v21 }
 0x4d7   :  { %v2450_v24 = vpop.eup %2129  ;;  %v642_v26 = vpop.permute.xlu1 %641 }
 0x4d8   :  { %645 = vrot.lane.b32.xlu1 %v634_v22, %s2235_s0  ;;  %v633_v29 = vmul.f32 %v2450_v24, %v2298_v20  ;;  %v652_v36 = vsel %vm294_vm3, %v2346_v43, %v642_v26  ;;  %v2529_v22 = vld [vmem:[#allocation5 + $0xe0] sm:$0xff]  ;;  %v1052_v26 = vld [vmem:[#allocation5 + $0xd8] sm:$0xff] }
 0x4d9   :  { %v640_v31 = vpop.permute.xlu0 %639 }
 0x4da   :  { %v651_v34 = vsel %vm294_vm3, %v2335_v37, %v640_v31  ;;  %643 = vrot.lane.b32.xlu0 %v633_v29, %s2235_s0  ;;  %v2532_v29 = vld [vmem:[#allocation5 + $0xc8] sm:$0xff] }
 0x4db   :  { %2025 = vmatprep.mubr.msk.f32.mxu0 %vm299_vm4, %v651_v34  ;;  %v1049_v34 = vld [vmem:[#allocation5 + $0xc0] sm:$0xff] }
 0x4dc   :  { %2026 = vmatmul.mubr.msk.f32.vlgmr.msra.gmra.mxu0 %vm299_vm4, %v652_v36  ;;  %v1008_v36 = vsub.f32 1.0, %v2429_v52 }
 0x54a   :  { %v646_v38 = vpop.permute.xlu1 %645 }
 0x54b   :  { %v654_v42 = vsel %vm294_vm3, %v2364_v48, %v646_v38 }
 0x54c   :  { %v644_v39 = vpop.permute.xlu0 %643 }
 0x54d   :  { %v653_v41 = vsel %vm294_vm3, %v2355_v46, %v644_v39 }
 0x54e   :  { %2028 = vmatprep.mubr.msk.f32.mxu0 %vm299_vm4, %v653_v41 }
 0x54f   :  { %2029 = vmatmul.mubr.msk.f32.gmra.mxu0 %vm299_vm4, %v654_v42 }
 0x550   :  { %2042 = vmatprep.mubr.msk.f32.mxu0 %vm135_vm1, %v2310_v27 }
 0x59c   :  { %v2027_v37 = vpop.f32.mrf.mxu0 }
 0x59d   :  { %805 = vrot.lane.b32.xlu1 %v2027_v37, %s2237_s1  ;;  %796 = vrot.lane.b32.xlu0 %v2027_v37, %s2238_s19 }
 0x59e   :  { %v773_v43 = vpop.f32.mrf.mxu0 }
 0x5a1   :  { %794 = vrot.lane.b32.xlu1 %v773_v43, %s2238_s19 }
 0x60f   :  { %v806_v46 = vpop.permute.xlu1 %805  ;;  %v2473_v44 = vpop.f32.mrf.mxu0 }
 0x610   :  { %v797_v48 = vpop.permute.xlu0 %796  ;;  %813 = vrot.lane.b32.xlu0 %v2473_v44, %s2238_s19 }
 0x611   :  { %v2477_v45 = vpop.f32.mrf.mxu0  ;;  %v802_v47 = vsel %vm800_vm8, %v797_v48, %v2473_v44 }
 0x612   :  { %2038 = vmatprep.subr.mxu0 %v802_v47  ;;  %811 = vrot.lane.b32.xlu1 %v2477_v45, %s2238_s19 }
 0x613   :  { %2039 = vmatpush3.msra.mxu0 %v802_v47  ;;  %v795_v28 = vpop.permute.xlu1 %794 }
 0x614   :  { %803 = vrot.lane.b32.xlu0 %v773_v43, %s2237_s1  ;;  %v801_v49 = vsel %vm800_vm8, %v795_v28, %v2477_v45  ;;  %v2542_v28 = vld [vmem:[#allocation2 + $0x20] sm:$0xff] }
 0x615   :  { %2040 = vmatprep.subr.mxu0 %v801_v49 }
 0x616   :  { %2041 = vmatpush3.msra.mxu0 %v801_v49 }
 0x617   :  { %2043 = vmatmul.mubr.msk.f32.vlgmr.msra.gmra.mxu0 %vm135_vm1, %v2306_v25 }
 0x618   :  { %2049 = vmatprep.mubr.msk.f32.mxu0 %vm135_vm1, %v2372_v58  ;;  %981 = vrot.lane.b32.xlu0 %v2404_v23, %s2237_s1 }
 0x682   :  { %v814_v50 = vpop.permute.xlu0 %813 }
 0x683   :  { %v818_v51 = vsel %vm800_vm8, %v806_v46, %v814_v50  ;;  %v1009_v46 = vsub.f32 1.0, %v2425_v30  ;;  %v2551_v50 = vld [vmem:[#allocation2 + $0x30] sm:$0xff] }
 0x684   :  { %2031 = vmatprep.subr.mxu1 %v818_v51  ;;  %v812_v32 = vpop.permute.xlu1 %811 }
 0x685   :  { %2032 = vmatpush3.msra.mxu1 %v818_v51 }
 0x686   :  { %v804_v35 = vpop.permute.xlu0 %803 }
 0x687   :  { %v817_v53 = vsel %vm800_vm8, %v804_v35, %v812_v32  ;;  %v1010_v32 = vsub.f32 1.0, %v2450_v24 }
 0x688   :  { %2033 = vmatprep.subr.mxu1 %v817_v53 }
 0x689   :  { %2034 = vmatpush3.msra.mxu1 %v817_v53 }
 0x68a   :  { %2036 = vmatmul.mubr.msk.f32.vlgmr.msra.gmra.mxu1 %vm135_vm1, %v2389_v11  ;;  %v982_v61 = vpop.permute.xlu0 %981  ;;  %1136 = vmatprep.subr.mxu1 %v2507_v1 }
 0x68b   :  { %1184 = vmatprep.mubr.f32.mxu1 %v2236_v33  ;;  %1137 = vmatpush1.msra.mxu1 %v1070_v3 }
 0x68c   :  { %1138 = vmatprep.subr.mxu1 %v2509_v4 }
 0x6d7   :  { %v2044_v54 = vpop.f32.mrf.mxu0 }
 0x6d9   :  { %v960_v23 = vpop.f32.mrf.mxu0 }
 0x74a   :  { %v2037_v55 = vpop.f32.mrf.mxu1 }
 0x74b   :  { %v966_v40 = vadd.f32 %v2044_v54, %v2037_v55 }
 0x74c   :  { %v885_v56 = vpop.f32.mrf.mxu1 }
 0x74d   :  { %v961_v57 = vadd.f32 %v960_v23, %v885_v56  ;;  %973 = vrot.lane.b32.xlu0 %v966_v40, %s2238_s19  ;;  %v978_v59 = vadd.f32 %v2027_v37, %v966_v40  ;;  %v1011_v23 = vsub.f32 1.0, %v2446_v18 }
 0x74f   :  { %v977_v60 = vadd.f32 %v961_v57, %v773_v43  ;;  %971 = vrot.lane.b32.xlu1 %v961_v57, %s2238_s19  ;;  %v985_v0 = vadd.f32 %v982_v61, %v978_v59 }
 0x751   :  { %v984_v62 = vadd.f32 %v982_v61, %v977_v60 }
 0x753   :  { %2131 = vtanh.f32 %v984_v62  ;;  %992 = vrot.lane.b32.xlu1 %v2288_v8, %s2239_s20  ;;  %v1067_v8 = vld [vmem:[#allocation5 + $0x150] sm:$0xff] }
 0x754   :  { %2133 = vtanh.f32 %v985_v0  ;;  %1139 = vmatpush1.msra.mxu1 %v1067_v8 }
 0x755   :  { %1140 = vmatprep.subr.mxu1 %v2513_v63 }
 0x757   :  { %994 = vrot.lane.b32.xlu1 %v2294_v19, %s2239_s20  ;;  %v1064_v19 = vld [vmem:[#allocation5 + $0x138] sm:$0xff] }
 0x758   :  { %1141 = vmatpush1.msra.mxu1 %v1064_v19 }
 0x75b   :  { %996 = vrot.lane.b32.xlu1 %v2298_v20, %s2239_s20 }
 0x75f   :  { %998 = vrot.lane.b32.xlu1 %v2302_v21, %s2239_s20  ;;  %v2516_v21 = vld [vmem:[#allocation5 + $0x128] sm:$0xff] }
 0x760   :  { %v2132_v2 = vpop.eup %2131  ;;  %1142 = vmatprep.subr.mxu1 %v2516_v21 }
 0x761   :  { %1016 = vrot.lane.b32.xlu0 %v2132_v2, %s2239_s20  ;;  %v2134_v20 = vpop.eup %2133  ;;  %1143 = vmatpush1.msra.mxu1 %v1061_v13 }
 0x762   :  { %1144 = vmatprep.subr.mxu1 %v2523_v14 }
 0x763   :  { %1145 = vmatpush1.msra.mxu1 %v1058_v15 }
 0x764   :  { %1146 = vmatprep.subr.mxu1 %v2526_v16 }
 0x765   :  { %1018 = vrot.lane.b32.xlu0 %v2134_v20, %s2239_s20  ;;  %1147 = vmatpush1.msra.mxu1 %v1055_v17 }
 0x766   :  { %1148 = vmatprep.subr.mxu1 %v2529_v22 }
 0x767   :  { %1149 = vmatpush1.msra.mxu1 %v1052_v26 }
 0x768   :  { %1150 = vmatprep.subr.mxu1 %v2532_v29 }
 0x769   :  { %1151 = vmatpush1.msra.mxu1 %v1049_v34 }
 0x7bf   :  { %v974_v5 = vpop.permute.xlu0 %973 }
 0x7c0   :  { %v980_v7 = vadd.f32 %v2473_v44, %v974_v5 }
 0x7c1   :  { %v972_v6 = vpop.permute.xlu1 %971 }
 0x7c2   :  { %v979_v9 = vadd.f32 %v972_v6, %v2477_v45  ;;  %v987_v12 = vadd.f32 %v982_v61, %v980_v7 }
 0x7c4   :  { %v986_v10 = vadd.f32 %v982_v61, %v979_v9 }
 0x7c5   :  { %v993_v31 = vpop.permute.xlu1 %992 }
 0x7c6   :  { %2135 = vtanh.f32 %v986_v10  ;;  %v1004_v41 = vmul.f32 %v2429_v52, %v993_v31  ;;  %v2547_v52 = vld [vmem:[#allocation2 + $0x28] sm:$0xff] }
 0x7c7   :  { %2137 = vtanh.f32 %v987_v12 }
 0x7c9   :  { %v995_v37 = vpop.permute.xlu1 %994 }
 0x7ca   :  { %v1005_v45 = vmul.f32 %v2425_v30, %v995_v37  ;;  %v2555_v30 = vld [vmem:[#allocation2 + $0x38] sm:$0xff] }
 0x7cd   :  { %v997_v51 = vpop.permute.xlu1 %996 }
 0x7ce   :  { %v1006_v54 = vmul.f32 %v2450_v24, %v997_v51 }
 0x7d1   :  { %v999_v35 = vpop.permute.xlu1 %998 }
 0x7d2   :  { %v1007_v59 = vmul.f32 %v2446_v18, %v999_v35 }
 0x7d3   :  { %v2136_v38 = vpop.eup %2135  ;;  %v1017_v39 = vpop.permute.xlu0 %1016 }
 0x7d4   :  { %v1028_v42 = vmul.f32 %v1017_v39, %v1008_v36  ;;  %1020 = vrot.lane.b32.xlu0 %v2136_v38, %s2239_s20  ;;  %v2138_v44 = vpop.eup %2137 }
 0x7d6   :  { %v1032_v43 = vadd.f32 %v1028_v42, %v1004_v41 }
 0x7d7   :  { %v1019_v48 = vpop.permute.xlu0 %1018 }
 0x7d8   :  { %v1029_v47 = vmul.f32 %v1019_v48, %v1009_v46  ;;  %1022 = vrot.lane.b32.xlu0 %v2138_v44, %s2239_s20  ;;  %1038 = vrot.lane.b32.xlu1 %v1032_v43, %s2238_s19 }
 0x7da   :  { %v1033_v49 = vadd.f32 %v1029_v47, %v1005_v45  ;;  %v2631_v45 = vld [vmem:[%s2757_s4 + $0x1] ss:$0 sm:$0xff]  ;;  %s2240_s4 = smov [#allocation7]  }
 0x7db   :  { %s1859_s25 = sshll.u32 %s2240_s4, 4  ;;  %s1860_s25 = int_to_ptr.vmem [resolvable:$true] %s1859_s25 }
 0x7dc   :  { %1092 = vrot.lane.b32.xlu0 %v2542_v28, %s2239_s20  ;;  %1040 = vrot.lane.b32.xlu1 %v1033_v49, %s2238_s19  ;;  %s2203_s26 = scalar_lea.vmem %s1860_s25, 512  ;;  %p2208_p11 = scmp.lt.s32.totalorder %s1860_s25, %s1860_s25 }
 0x7dd   :  { %p2204_p10 = scmp.ne.s32.totalorder %s1860_s25, %s2203_s26  ;;  %p2209_p12 = scmp.lt.s32.totalorder %s2203_s26, %s2203_s26 }
 0x7df   :  { %p2210_p13 = por %p2209_p12, %p2208_p11 }
 0x7e0   :  { %1094 = vrot.lane.b32.xlu0 %v2547_v52, %s2239_s20 }
 0x7e1   :  { %p2211_p0 = pnand %p2210_p13, %p2204_p10 }
 0x7e4   :  { %1096 = vrot.lane.b32.xlu0 %v2551_v50, %s2239_s20 }
 0x7e8   :  { %1098 = vrot.lane.b32.xlu0 %v2555_v30, %s2239_s20 }
 0x846   :  { %v1021_v53 = vpop.permute.xlu0 %1020 }
 0x847   :  { %v1030_v55 = vmul.f32 %v1021_v53, %v1010_v32  ;;  %v1072_v32 = vld [vmem:[#allocation5 + $0x178] sm:$0xff] }
 0x849   :  { %v1034_v40 = vadd.f32 %v1030_v55, %v1006_v54 }
 0x84a   :  { %v2562_v56 = vpop.permute.xlu1 %1038  ;;  %v1023_v57 = vpop.permute.xlu0 %1022 }
 0x84b   :  { %v1044_v60 = vsel %vm800_vm8, %v2562_v56, %v1034_v40  ;;  %v1031_v61 = vmul.f32 %v1023_v57, %v1011_v23  ;;  %1082 = vrot.lane.b32.xlu1 %v1034_v40, %s2238_s19  ;;  %v1069_v40 = vld [vmem:[#allocation5 + $0x160] sm:$0xff]  ;;  %v1066_v57 = vld [vmem:[#allocation5 + $0x148] sm:$0xff] }
 0x84c   :  { %1046 = vst.msk [vmem:[#allocation7] sm:$0xff] %vm416_vm7, %v1044_v60  ;;  %v1060_v60 = vld [vmem:[#allocation5 + $0x118] sm:$0xff] }
 0x84d   :  { %v1035_v62 = vadd.f32 %v1031_v61, %v1007_v59  ;;  %v1063_v59 = vld [vmem:[#allocation5 + $0x130] sm:$0xff] }
 0x84e   :  { %v2569_v0 = vpop.permute.xlu1 %1040  ;;  %v2571_v24 = vpop.permute.xlu0 %1092 }
 0x84f   :  { %v1045_v2 = vsel %vm800_vm8, %v2569_v0, %v1035_v62  ;;  %v1104_v18 = vsel %vm800_vm8, %v2562_v56, %v2571_v24  ;;  %1084 = vrot.lane.b32.xlu1 %v1035_v62, %s2238_s19 }
 0x850   :  { %1047 = vst.msk [vmem:[#allocation7 + $0x8] sm:$0xff] %vm416_vm7, %v1045_v2  ;;  %1905 = vmatmul.mubr.msk.f32.vlgmr.msra.gmra.mxu1 %vm416_vm7, %v1104_v18  ;;  %v1057_v2 = vld [vmem:[#allocation5 + $0x100] sm:$0xff] }
 0x851   :  { %1190 = vmatprep.mubr.f32.mxu1 %v2236_v33 }
 0x852   :  { %v2582_v3 = vpop.permute.xlu0 %1094 }
 0x853   :  { %v1105_v8 = vsel %vm800_vm8, %v2569_v0, %v2582_v3 }
 0x854   :  { %1906 = vmatmul.mubr.msk.f32.gmra.mxu1 %vm416_vm7, %v1105_v8 }
 0x855   :  { %1196 = vmatprep.mubr.f32.mxu1 %v2236_v33 }
 0x856   :  { %v2589_v19 = vpop.permute.xlu0 %1096 }
 0x85a   :  { %v2597_v6 = vpop.permute.xlu0 %1098 }
 0x8bd   :  { %v2591_v20 = vpop.permute.xlu1 %1082 }
 0x8be   :  { %v1106_v5 = vsel %vm800_vm8, %v2591_v20, %v2589_v19 }
 0x8bf   :  { %1907 = vmatmul.mubr.msk.f32.gmra.mxu1 %vm416_vm7, %v1106_v5 }
 0x8c0   :  { %1202 = vmatprep.mubr.f32.mxu1 %v2236_v33 }
 0x8c1   :  { %v2600_v7 = vpop.permute.xlu1 %1084 }
 0x8c2   :  { %v1107_v9 = vsel %vm800_vm8, %v2600_v7, %v2597_v6 }
 0x8c3   :  { %1908 = vmatmul.mubr.msk.f32.gmra.mxu1 %vm416_vm7, %v1107_v9 }
 0x8c4   :  { %2085 = vmatprep.mubr.msk.f32.mxu1 %vm135_vm1, %v2372_v58 }
 0x910   :  { %v1186_v10 = vpop.f32.mrf.mxu1 }
 0x912   :  { %v1188_v12 = vpop.f32.mrf.mxu1 }
 0x914   :  { %v1192_v13 = vpop.f32.mrf.mxu1 }
 0x916   :  { %v1194_v15 = vpop.f32.mrf.mxu1 }
 0x97f   :  { %v2608_v17 = vpop.f32.mrf.mxu1 }
 0x981   :  { %v1200_v26 = vpop.f32.mrf.mxu1 }
 0x982   :  { %1221 = vrot.lane.b32.xlu0 %v1200_v26, %s2237_s1 }
 0x983   :  { %v2611_v33 = vpop.f32.mrf.mxu1 }
 0x985   :  { %v1206_v31 = vpop.f32.mrf.mxu1 }
 0x986   :  { %1211 = vrot.lane.b32.xlu0 %v1186_v10, %s2237_s1  ;;  %1223 = vrot.lane.b32.xlu1 %v1206_v31, %s2237_s1 }
 0x98a   :  { %1213 = vrot.lane.b32.xlu1 %v1192_v13, %s2237_s1 }
 0x9f4   :  { %v1222_v34 = vpop.permute.xlu0 %1221 }
 0x9f5   :  { %v1227_v38 = vsel %vm416_vm7, %v1188_v12, %v1222_v34 }
 0x9f8   :  { %v1224_v58 = vpop.permute.xlu1 %1223  ;;  %v1212_v39 = vpop.permute.xlu0 %1211 }
 0x9f9   :  { %v1228_v36 = vsel %vm416_vm7, %v1194_v15, %v1224_v58  ;;  %v1217_v37 = vsel %vm416_vm7, %v1212_v39, %v2608_v17 }
 0x9fa   :  { %2045 = vmatprep.subr.mxu0 %v1228_v36 }
 0x9fb   :  { %2046 = vmatpush3.msra.mxu0 %v1228_v36 }
 0x9fc   :  { %v1214_v41 = vpop.permute.xlu1 %1213  ;;  %2047 = vmatprep.subr.mxu0 %v1227_v38 }
 0x9fd   :  { %2048 = vmatpush3.msra.mxu0 %v1227_v38  ;;  %v1218_v42 = vsel %vm416_vm7, %v1214_v41, %v2611_v33 }
 0x9fe   :  { %2050 = vmatmul.mubr.msk.f32.vlgmr.msra.gmra.mxu0 %vm135_vm1, %v2389_v11  ;;  %2052 = vmatprep.subr.mxu0 %v1218_v42 }
 0x9ff   :  { %2053 = vmatpush3.msra.mxu0 %v1218_v42  ;;  %2056 = vmatprep.mubr.msk.f32.mxu0 %vm135_vm1, %v2310_v27 }
 0xa00   :  { %2054 = vmatprep.subr.mxu0 %v1217_v37 }
 0xa01   :  { %2055 = vmatpush3.msra.mxu0 %v1217_v37 }
 0xa02   :  { %2057 = vmatmul.mubr.msk.f32.vlgmr.msra.gmra.mxu0 %vm135_vm1, %v2306_v25 }
 0xabe   :  { %v2051_v43 = vpop.f32.mrf.mxu0 }
 0xac0   :  { %v1295_v46 = vpop.f32.mrf.mxu0 }
 0xac2   :  { %v2058_v44 = vpop.f32.mrf.mxu0 }
 0xac3   :  { %v1376_v48 = vadd.f32 %v2058_v44, %v2051_v43 }
 0xac4   :  { %v1370_v47 = vpop.f32.mrf.mxu0 }
 0xac5   :  { %v1388_v49 = vadd.f32 %v1376_v48, %v1192_v13  ;;  %v1371_v51 = vadd.f32 %v1370_v47, %v1295_v46  ;;  %1383 = vrot.lane.b32.xlu0 %v1376_v48, %s2237_s1 }
 0xac7   :  { %v1398_v35 = vadd.f32 %v2631_v45, %v1388_v49  ;;  %v1387_v53 = vadd.f32 %v1371_v51, %v1186_v10  ;;  %1381 = vrot.lane.b32.xlu1 %v1371_v51, %s2237_s1 }
 0xac9   :  { %v1915_v54 = vmul.f32 -1.442695, %v1398_v35  ;;  %v1397_v55 = vadd.f32 %v2631_v45, %v1387_v53  ;;  %1495 = vrot.lane.b32.xlu0 %v1072_v32, %s2237_s1 }
 0xacb   :  { %2139 = vpow2.f32 %v1915_v54  ;;  %v1914_v23 = vmul.f32 -1.442695, %v1397_v55  ;;  %1493 = vrot.lane.b32.xlu1 %v2507_v1, %s2237_s1 }
 0xacd   :  { %2141 = vpow2.f32 %v1914_v23  ;;  %1491 = vrot.lane.b32.xlu0 %v1069_v40, %s2237_s1 }
 0xacf   :  { %1489 = vrot.lane.b32.xlu1 %v2509_v4, %s2237_s1 }
 0xad1   :  { %1487 = vrot.lane.b32.xlu0 %v1066_v57, %s2237_s1 }
 0xad3   :  { %1485 = vrot.lane.b32.xlu1 %v2513_v63, %s2237_s1  ;;  %v1054_v63 = vld [vmem:[#allocation5 + $0xe8] sm:$0xff] }
 0xad5   :  { %1483 = vrot.lane.b32.xlu0 %v1063_v59, %s2237_s1 }
 0xad7   :  { %1481 = vrot.lane.b32.xlu1 %v2516_v21, %s2237_s1  ;;  %v1051_v21 = vld [vmem:[#allocation5 + $0xd0] sm:$0xff] }
 0xad8   :  { %v2140_v1 = vpop.eup %2139 }
 0xad9   :  { %v1414_v61 = vadd.f32 1.0, %v2140_v1  ;;  %1479 = vrot.lane.b32.xlu0 %v1060_v60, %s2237_s1 }
 0xada   :  { %v2142_v62 = vpop.eup %2141 }
 0xadb   :  { %2143 = vrcp.f32 %v1414_v61  ;;  %v1413_v4 = vadd.f32 1.0, %v2142_v62  ;;  %1477 = vrot.lane.b32.xlu1 %v2523_v14, %s2237_s1 }
 0xadd   :  { %2145 = vrcp.f32 %v1413_v4  ;;  %1475 = vrot.lane.b32.xlu0 %v1057_v2, %s2237_s1 }
 0xadf   :  { %1473 = vrot.lane.b32.xlu1 %v2526_v16, %s2237_s1 }
 0xae1   :  { %1471 = vrot.lane.b32.xlu0 %v1054_v63, %s2237_s1 }
 0xae3   :  { %1469 = vrot.lane.b32.xlu1 %v2529_v22, %s2237_s1 }
 0xae5   :  { %1467 = vrot.lane.b32.xlu0 %v1051_v21, %s2237_s1 }
 0xae7   :  { %1465 = vrot.lane.b32.xlu1 %v2532_v29, %s2237_s1 }
 0xae8   :  { %v2661_v18 = vpop.eup %2143 }
 0xae9   :  { %v1426_v14 = vmul.f32 %v2661_v18, %v2547_v52 }
 0xaea   :  { %v2665_v8 = vpop.eup %2145 }
 0xaeb   :  { %1435 = vrot.lane.b32.xlu0 %v1426_v14, %s2239_s20  ;;  %v1425_v16 = vmul.f32 %v2665_v8, %v2542_v28 }
 0xaed   :  { %1433 = vrot.lane.b32.xlu1 %v1425_v16, %s2239_s20 }
 0xb37   :  { %v1384_v22 = vpop.permute.xlu0 %1383 }
 0xb38   :  { %v1390_v5 = vadd.f32 %v1384_v22, %v2611_v33 }
 0xb39   :  { %v1382_v9 = vpop.permute.xlu1 %1381 }
 0xb3a   :  { %v1400_v29 = vadd.f32 %v2631_v45, %v1390_v5  ;;  %v1389_v10 = vadd.f32 %v1382_v9, %v2608_v17 }
 0xb3b   :  { %v1496_v12 = vpop.permute.xlu0 %1495 }
 0xb3c   :  { %v1917_v13 = vmul.f32 -1.442695, %v1400_v29  ;;  %v1399_v52 = vadd.f32 %v2631_v45, %v1389_v10 }
 0xb3d   :  { %v1494_v15 = vpop.permute.xlu1 %1493 }
 0xb3e   :  { %2147 = vpow2.f32 %v1917_v13  ;;  %v1916_v26 = vmul.f32 -1.442695, %v1399_v52  ;;  %v1504_v31 = vsel %vm416_vm7, %v1494_v15, %v1496_v12 }
 0xb3f   :  { %v1492_v28 = vpop.permute.xlu0 %1491  ;;  %2059 = vmatprep.subr.mxu0 %v1504_v31 }
 0xb40   :  { %2149 = vpow2.f32 %v1916_v26  ;;  %2060 = vmatpush3.msra.mxu0 %v1504_v31 }
 0xb41   :  { %v1490_v34 = vpop.permute.xlu1 %1489 }
 0xb42   :  { %v1503_v33 = vsel %vm416_vm7, %v1490_v34, %v1492_v28 }
 0xb43   :  { %v1488_v58 = vpop.permute.xlu0 %1487  ;;  %2061 = vmatprep.subr.mxu0 %v1503_v33 }
 0xb44   :  { %2062 = vmatpush3.msra.mxu0 %v1503_v33 }
 0xb45   :  { %v1486_v17 = vpop.permute.xlu1 %1485 }
 0xb46   :  { %v1502_v36 = vsel %vm416_vm7, %v1486_v17, %v1488_v58 }
 0xb47   :  { %v1484_v38 = vpop.permute.xlu0 %1483  ;;  %2063 = vmatprep.subr.mxu0 %v1502_v36 }
 0xb48   :  { %2064 = vmatpush3.msra.mxu0 %v1502_v36 }
 0xb49   :  { %v1482_v39 = vpop.permute.xlu1 %1481 }
 0xb4a   :  { %v1501_v41 = vsel %vm416_vm7, %v1482_v39, %v1484_v38 }
 0xb4b   :  { %v2148_v42 = vpop.eup %2147  ;;  %v1480_v37 = vpop.permute.xlu0 %1479  ;;  %2065 = vmatprep.subr.mxu0 %v1501_v41 }
 0xb4c   :  { %v1416_v43 = vadd.f32 1.0, %v2148_v42  ;;  %2066 = vmatpush3.msra.mxu0 %v1501_v41 }
 0xb4d   :  { %v2150_v46 = vpop.eup %2149  ;;  %v1478_v44 = vpop.permute.xlu1 %1477 }
 0xb4e   :  { %2151 = vrcp.f32 %v1416_v43  ;;  %v1415_v48 = vadd.f32 1.0, %v2150_v46  ;;  %v1500_v47 = vsel %vm416_vm7, %v1478_v44, %v1480_v37  ;;  %v1814_v46 = vsub.f32 1.0, %v2661_v18 }
 0xb4f   :  { %v1476_v49 = vpop.permute.xlu0 %1475  ;;  %2067 = vmatprep.subr.mxu0 %v1500_v47 }
 0xb50   :  { %2153 = vrcp.f32 %v1415_v48  ;;  %2068 = vmatpush3.msra.mxu0 %v1500_v47  ;;  %v1810_v47 = vmul.f32 %v2661_v18, %v2582_v3 }
 0xb51   :  { %v1474_v51 = vpop.permute.xlu1 %1473 }
 0xb52   :  { %v1499_v32 = vsel %vm416_vm7, %v1474_v51, %v1476_v49  ;;  %v1813_v51 = vsub.f32 1.0, %v2665_v8 }
 0xb53   :  { %v1472_v35 = vpop.permute.xlu0 %1471  ;;  %2069 = vmatprep.subr.mxu0 %v1499_v32 }
 0xb54   :  { %2070 = vmatpush3.msra.mxu0 %v1499_v32 }
 0xb55   :  { %v1470_v53 = vpop.permute.xlu1 %1469 }
 0xb56   :  { %v1498_v54 = vsel %vm416_vm7, %v1470_v53, %v1472_v35 }
 0xb57   :  { %2071 = vmatprep.subr.mxu0 %v1498_v54  ;;  %v1468_v55 = vpop.permute.xlu0 %1467 }
 0xb58   :  { %2072 = vmatpush3.msra.mxu0 %v1498_v54  ;;  %v1809_v54 = vmul.f32 %v2665_v8, %v2571_v24 }
 0xb59   :  { %v1466_v40 = vpop.permute.xlu1 %1465 }
 0xb5a   :  { %v1497_v23 = vsel %vm416_vm7, %v1466_v40, %v1468_v55 }
 0xb5b   :  { %v2683_v57 = vpop.eup %2151  ;;  %2073 = vmatprep.subr.mxu0 %v1497_v23 }
 0xb5c   :  { %v1428_v59 = vmul.f32 %v2683_v57, %v2555_v30  ;;  %2074 = vmatpush3.msra.mxu0 %v1497_v23  ;;  %v1816_v3 = vsub.f32 1.0, %v2683_v57  ;;  %v1812_v23 = vmul.f32 %v2683_v57, %v2597_v6 }
 0xb5d   :  { %v2687_v60 = vpop.eup %2153  ;;  %v1436_v1 = vpop.permute.xlu0 %1435 }
 0xb5e   :  { %1439 = vrot.lane.b32.xlu0 %v1428_v59, %s2239_s20  ;;  %v1427_v61 = vmul.f32 %v2687_v60, %v2551_v50  ;;  %v1446_v4 = vsel %vm800_vm8, %v2569_v0, %v1436_v1  ;;  %v1815_v1 = vsub.f32 1.0, %v2687_v60  ;;  %v1811_v24 = vmul.f32 %v2687_v60, %v2589_v19 }
 0xb5f   :  { %v1434_v62 = vpop.permute.xlu1 %1433 }
 0xb60   :  { %v1445_v2 = vsel %vm800_vm8, %v2562_v56, %v1434_v62  ;;  %1437 = vrot.lane.b32.xlu1 %v1427_v61, %s2239_s20 }
 0xb61   :  { %2075 = vmatprep.mubr.msk.f32.mxu0 %vm416_vm7, %v1445_v2 }
 0xb62   :  { %2076 = vmatmul.mubr.msk.f32.vlgmr.msra.gmra.mxu0 %vm416_vm7, %v1446_v4 }
 0xbd0   :  { %v1440_v30 = vpop.permute.xlu0 %1439 }
 0xbd1   :  { %v1448_v50 = vsel %vm800_vm8, %v2600_v7, %v1440_v30 }
 0xbd2   :  { %v1438_v63 = vpop.permute.xlu1 %1437 }
 0xbd3   :  { %v1447_v21 = vsel %vm800_vm8, %v2591_v20, %v1438_v63 }
 0xbd4   :  { %2078 = vmatprep.mubr.msk.f32.mxu0 %vm416_vm7, %v1447_v21 }
 0xbd5   :  { %2079 = vmatmul.mubr.msk.f32.gmra.mxu0 %vm416_vm7, %v1448_v50 }
 0xbd6   :  { %2092 = vmatprep.mubr.msk.f32.mxu0 %vm135_vm1, %v2310_v27 }
 0xc22   :  { %v2077_v56 = vpop.f32.mrf.mxu0 }
 0xc23   :  { %1622 = vrot.lane.b32.xlu0 %v2077_v56, %s2237_s1  ;;  %1614 = vrot.lane.b32.xlu1 %v2077_v56, %s2238_s19 }
 0xc24   :  { %v1591_v0 = vpop.f32.mrf.mxu0 }
 0xc27   :  { %1612 = vrot.lane.b32.xlu0 %v1591_v0, %s2238_s19 }
 0xc95   :  { %v1623_v14 = vpop.permute.xlu0 %1622  ;;  %v2080_v20 = vpop.f32.mrf.mxu0 }
 0xc96   :  { %v1615_v16 = vpop.permute.xlu1 %1614  ;;  %1630 = vrot.lane.b32.xlu1 %v2080_v20, %s2238_s19 }
 0xc97   :  { %v1601_v7 = vpop.f32.mrf.mxu0  ;;  %v1619_v22 = vsel %vm800_vm8, %v1615_v16, %v2080_v20 }
 0xc98   :  { %2088 = vmatprep.subr.mxu0 %v1619_v22  ;;  %1628 = vrot.lane.b32.xlu0 %v1601_v7, %s2238_s19 }
 0xc99   :  { %2089 = vmatpush3.msra.mxu0 %v1619_v22  ;;  %v1613_v27 = vpop.permute.xlu0 %1612 }
 0xc9a   :  { %1620 = vrot.lane.b32.xlu1 %v1591_v0, %s2237_s1  ;;  %v1618_v5 = vsel %vm800_vm8, %v1613_v27, %v1601_v7 }
 0xc9b   :  { %2090 = vmatprep.subr.mxu0 %v1618_v5 }
 0xc9c   :  { %2091 = vmatpush3.msra.mxu0 %v1618_v5 }
 0xc9d   :  { %2093 = vmatmul.mubr.msk.f32.vlgmr.msra.gmra.mxu0 %vm135_vm1, %v2306_v25 }
 0xc9e   :  { %1798 = vrot.lane.b32.xlu1 %v2631_v45, %s2237_s1 }
 0xd08   :  { %v1631_v9 = vpop.permute.xlu1 %1630 }
 0xd09   :  { %v1635_v29 = vsel %vm800_vm8, %v1623_v14, %v1631_v9 }
 0xd0a   :  { %2081 = vmatprep.subr.mxu1 %v1635_v29  ;;  %v1629_v10 = vpop.permute.xlu0 %1628 }
 0xd0b   :  { %2082 = vmatpush3.msra.mxu1 %v1635_v29 }
 0xd0c   :  { %v1621_v12 = vpop.permute.xlu1 %1620 }
 0xd0d   :  { %v1634_v13 = vsel %vm800_vm8, %v1621_v12, %v1629_v10 }
 0xd0e   :  { %2083 = vmatprep.subr.mxu1 %v1634_v13 }
 0xd0f   :  { %2084 = vmatpush3.msra.mxu1 %v1634_v13 }
 0xd10   :  { %2086 = vmatmul.mubr.msk.f32.vlgmr.msra.gmra.mxu1 %vm135_vm1, %v2389_v11  ;;  %v1799_v26 = vpop.permute.xlu1 %1798 }
 0xd5d   :  { %v2094_v52 = vpop.f32.mrf.mxu0 }
 0xd5f   :  { %v1777_v31 = vpop.f32.mrf.mxu0 }
 0xdd0   :  { %v2087_v15 = vpop.f32.mrf.mxu1 }
 0xdd1   :  { %v1783_v25 = vadd.f32 %v2094_v52, %v2087_v15 }
 0xdd2   :  { %v1702_v45 = vpop.f32.mrf.mxu1 }
 0xdd3   :  { %v1795_v28 = vadd.f32 %v2077_v56, %v1783_v25  ;;  %v1778_v34 = vadd.f32 %v1777_v31, %v1702_v45  ;;  %1790 = vrot.lane.b32.xlu1 %v1783_v25, %s2238_s19 }
 0xdd5   :  { %v1794_v33 = vadd.f32 %v1778_v34, %v1591_v0  ;;  %v1802_v58 = vadd.f32 %v1799_v26, %v1795_v28  ;;  %1788 = vrot.lane.b32.xlu0 %v1778_v34, %s2238_s19 }
 0xdd7   :  { %v1801_v17 = vadd.f32 %v1799_v26, %v1794_v33  ;;  %2155 = vtanh.f32 %v1802_v58 }
 0xdd9   :  { %2157 = vtanh.f32 %v1801_v17 }
 0xde4   :  { %v2156_v36 = vpop.eup %2155 }
 0xde5   :  { %1823 = vrot.lane.b32.xlu1 %v2156_v36, %s2239_s20 }
 0xde6   :  { %v2158_v11 = vpop.eup %2157 }
 0xde7   :  { %1821 = vrot.lane.b32.xlu0 %v2158_v11, %s2239_s20 }
 0xe45   :  { %v1791_v38 = vpop.permute.xlu1 %1790 }
 0xe46   :  { %v1797_v39 = vadd.f32 %v2080_v20, %v1791_v38 }
 0xe47   :  { %v1789_v41 = vpop.permute.xlu0 %1788 }
 0xe48   :  { %v1804_v42 = vadd.f32 %v1799_v26, %v1797_v39  ;;  %v1796_v37 = vadd.f32 %v1789_v41, %v1601_v7 }
 0xe4a   :  { %2159 = vtanh.f32 %v1804_v42  ;;  %v1803_v43 = vadd.f32 %v1799_v26, %v1796_v37 }
 0xe4c   :  { %2161 = vtanh.f32 %v1803_v43 }
 0xe57   :  { %v2160_v44 = vpop.eup %2159  ;;  %v1824_v48 = vpop.permute.xlu1 %1823 }
 0xe58   :  { %v1834_v49 = vmul.f32 %v1824_v48, %v1814_v46  ;;  %1827 = vrot.lane.b32.xlu1 %v2160_v44, %s2239_s20 }
 0xe59   :  { %v2162_v32 = vpop.eup %2161  ;;  %v1822_v35 = vpop.permute.xlu0 %1821 }
 0xe5a   :  { %v1838_v53 = vadd.f32 %v1834_v49, %v1810_v47  ;;  %v1833_v55 = vmul.f32 %v1822_v35, %v1813_v51  ;;  %1825 = vrot.lane.b32.xlu0 %v2162_v32, %s2239_s20 }
 0xe5c   :  { %v1837_v40 = vadd.f32 %v1833_v55, %v1809_v54  ;;  %1845 = vrot.lane.b32.xlu1 %v1838_v53, %s2238_s19 }
 0xe5e   :  { %1843 = vrot.lane.b32.xlu0 %v1837_v40, %s2238_s19 }
 0xeca   :  { %v1828_v18 = vpop.permute.xlu1 %1827 }
 0xecb   :  { %v1836_v59 = vmul.f32 %v1828_v18, %v1816_v3 }
 0xecc   :  { %v1826_v61 = vpop.permute.xlu0 %1825 }
 0xecd   :  { %v1840_v62 = vadd.f32 %v1836_v59, %v1812_v23  ;;  %v1835_v8 = vmul.f32 %v1826_v61, %v1815_v1 }
 0xece   :  { %v1846_v2 = vpop.permute.xlu1 %1845 }
 0xecf   :  { %v1839_v4 = vadd.f32 %v1835_v8, %v1811_v24  ;;  %v1850_v30 = vsel %vm800_vm8, %v1846_v2, %v1840_v62 }
 0xed0   :  { %1853 = vst.msk [vmem:[#allocation7 + $0x18] sm:$0xff] %vm416_vm7, %v1850_v30  ;;  %v1844_v63 = vpop.permute.xlu0 %1843 }
 0xed1   :  { %v1849_v6 = vsel %vm800_vm8, %v1844_v63, %v1839_v4 }
 0xed2   :  { %1852 = vst.msk [vmem:[#allocation7 + $0x10] sm:$0xff] %vm416_vm7, %v1849_v6 }
 0xed3   :  { %2214 = shalt.err (!%p2211_p0)
}
 0xed4   :  { %1865 = dma.vmem_to_hbm [thread:$0]  %s1860_s25, 512, %s2758_s5, [#allocation4], %s2230_s21, %s2230_s21, %s2231_s22  }
 0xed5   :  { %2227 = dma.done.wait [#allocation4], 512  }
 0xed6   :  { %2228 = vsyncadd [#allocation4], 4294966784 }
 0xed7   :  { %1869 = vsyncpa [#allocation3], 1 }
 0xed8   :  { %1870 = vsyncpa [#allocation6], 1 }
 0xed9   :  { %1871 = vsyncpa [#allocation4], 1 }

</bundles_post_ra>
